<compile_context>
chip_gen: v7x
topology: tpu7x:2x2x1
jax: 0.10.0
libtpu: 0.0.40
codegen_flags: <defaults>
</compile_context>

<pallas_src>
import jax
import jax.numpy as jnp
from jax import lax
from jax.experimental import pallas as pl
from jax.experimental.pallas import tpu as pltpu

SQRT_HALF = 0.7071067811865476
BN_EPS = 1e-5

_TM_PREF = 128      # row tile for passes 1/2 (re-derive per generation; tiny here)
_R3_PREF = 8        # row tile (in wide rows) for the lane-dense BN2 pass

_PARALLEL = pltpu.CompilerParams(dimension_semantics=("parallel",))


def _erf_poly(x):
    # Abramowitz & Stegun 7.1.26, |err| < 1.5e-7.  Exact divide kept (approx
    # EUP reciprocal is a small free win but eats accuracy headroom).
    a1, a2, a3, a4, a5 = (0.254829592, -0.284496736, 1.421413741,
                          -1.453152027, 1.061405429)
    p = 0.3275911
    sgn = jnp.where(x >= 0.0, 1.0, -1.0)
    ax = jnp.abs(x)
    t = 1.0 / (1.0 + p * ax)
    poly = t * (a1 + t * (a2 + t * (a3 + t * (a4 + t * a5))))
    return sgn * (1.0 - poly * jnp.exp(-ax * ax))


def _gelu(x):
    # Exact (erf-based) GELU, matching torch.nn.GELU() default.
    return 0.5 * x * (1.0 + _erf_poly(x * SQRT_HALF))


# ---------------------------------------------------------------------------
# Pass 1: 3x3 conv as one packed matmul, GELU, residual add, BN1 partial stats
# ---------------------------------------------------------------------------
def _stage1_kernel(xcol_ref, w1_ref, s1_ref, st_ref):
    # xcol_ref: (TM, 9C) bf16 — 9 im2col taps packed along lanes (tap-major)
    # w1_ref  : (9C, C)  bf16 — packed 3x3 conv weight (rows tap-major, Cin)
    # s1_ref  : (TM, C)  f32  — stage-1 output (pre-BN1)
    # st_ref  : (1, 2, C) f32 — per-tile [sum; sum_of_squares] for BN1
    c = w1_ref.shape[1]
    acc = jnp.dot(xcol_ref[...], w1_ref[...],
                  preferred_element_type=jnp.float32)          # (TM, C)
    residual = xcol_ref[:, 4 * c:5 * c].astype(jnp.float32)    # center tap == x
    s1 = _gelu(acc) + residual
    s1_ref[...] = s1
    st_ref[0] = jnp.concatenate(
        [jnp.sum(s1, axis=0, keepdims=True),
         jnp.sum(s1 * s1, axis=0, keepdims=True)], axis=0)


# ---------------------------------------------------------------------------
# Pass 2: BN1 (folded into W2 / bias), conv2(1x1)+GELU, conv3(1x1), BN2 stats
# ---------------------------------------------------------------------------
def _mid_kernel(s1_ref, w2_ref, b2_ref, w3_ref, y_ref, st_ref):
    # s1_ref: (TM, C) f32; w2_ref: (C, 4C) f32 (already scaled by BN1 invstd)
    # b2_ref: (1, 4C) f32 (BN1 shift folded through W2); w3_ref: (4C, Cout) f32
    # y_ref : (TM, Cout) f32 (pre-BN2); st_ref: (1, 2, Cout) f32 partial stats
    h = jnp.dot(s1_ref[...], w2_ref[...],
                preferred_element_type=jnp.float32) + b2_ref[...]
    h = _gelu(h)
    y = jnp.dot(h, w3_ref[...], preferred_element_type=jnp.float32)
    y_ref[...] = y
    st_ref[0] = jnp.concatenate(
        [jnp.sum(y, axis=0, keepdims=True),
         jnp.sum(y * y, axis=0, keepdims=True)], axis=0)


# ---------------------------------------------------------------------------
# Pass 3: BN2 normalization, lane-dense layout (N*H, W*Cout)
# ---------------------------------------------------------------------------
def _bn2_kernel(y_ref, scale_ref, shift_ref, o_ref):
    o_ref[...] = y_ref[...] * scale_ref[...] + shift_ref[...]


def _row_tile(total, pref):
    """Largest tile <= pref dividing `total` that satisfies the sublane rule
    (multiple of 8, or the full extent)."""
    if total <= pref:
        return total
    t = pref
    while t >= 8:
        if total % t == 0:
            return t
        t //= 2
    return total


@jax.jit
def irmlp_forward(x_nchw, w1_hwio, w2, w3):
    """x_nchw: (N, C, H, W); w1_hwio: (3, 3, C, C); w2: (C, 4C); w3: (4C, Cout)."""
    n, c, h, w = x_nchw.shape
    m = n * h * w
    hid = w2.shape[1]
    c_out = w3.shape[1]

    # ---- host-side layout: NCHW -> NHWC -> packed im2col (M, 9C), bf16 ----
    x_nhwc = jnp.transpose(x_nchw, (0, 2, 3, 1))
    xpad = jnp.pad(x_nhwc, ((0, 0), (1, 1), (1, 1), (0, 0)))
    cols = [xpad[:, dy:dy + h, dx:dx + w, :].reshape(m, c)
            for dy in range(3) for dx in range(3)]
    xcol = jnp.concatenate(cols, axis=1).astype(jnp.bfloat16)     # (M, 9C)
    w1p = w1_hwio.reshape(9 * c, c).astype(jnp.bfloat16)          # (9C, C)

    tm = _row_tile(m, _TM_PREF)
    nt = m // tm

    # ---- Pass 1: conv3x3 + GELU + residual, BN1 partial stats ----
    s1, st1 = pl.pallas_call(
        _stage1_kernel,
        out_shape=(jax.ShapeDtypeStruct((m, c), jnp.float32),
                   jax.ShapeDtypeStruct((nt, 2, c), jnp.float32)),
        grid=(nt,),
        in_specs=[pl.BlockSpec((tm, 9 * c), lambda i: (i, 0)),
                  pl.BlockSpec((9 * c, c), lambda i: (0, 0))],
        out_specs=(pl.BlockSpec((tm, c), lambda i: (i, 0)),
                   pl.BlockSpec((1, 2, c), lambda i: (i, 0, 0))),
        compiler_params=_PARALLEL,
    )(xcol, w1p)

    # tiny cross-tile BN1 stat reduction + fold BN1 into W2/bias
    sums1 = jnp.sum(st1, axis=0)                       # (2, C)
    mean1 = sums1[0] / m
    var1 = jnp.maximum(sums1[1] / m - mean1 * mean1, 0.0)
    inv1 = lax.rsqrt(var1 + BN_EPS)
    w2_eff = (w2.astype(jnp.float32) * inv1[:, None])              # (C, 4C)
    b2_eff = ((-(mean1 * inv1)) @ w2.astype(jnp.float32))[None, :]  # (1, 4C)

    # ---- Pass 2: (BN1 folded) conv2 + GELU + conv3, BN2 partial stats ----
    y2d, st2 = pl.pallas_call(
        _mid_kernel,
        out_shape=(jax.ShapeDtypeStruct((m, c_out), jnp.float32),
                   jax.ShapeDtypeStruct((nt, 2, c_out), jnp.float32)),
        grid=(nt,),
        in_specs=[pl.BlockSpec((tm, c), lambda i: (i, 0)),
                  pl.BlockSpec((c, hid), lambda i: (0, 0)),
                  pl.BlockSpec((1, hid), lambda i: (0, 0)),
                  pl.BlockSpec((hid, c_out), lambda i: (0, 0))],
        out_specs=(pl.BlockSpec((tm, c_out), lambda i: (i, 0)),
                   pl.BlockSpec((1, 2, c_out), lambda i: (i, 0, 0))),
        compiler_params=_PARALLEL,
    )(s1, w2_eff, b2_eff, w3.astype(jnp.float32))

    sums2 = jnp.sum(st2, axis=0)
    mean2 = sums2[0] / m
    var2 = jnp.maximum(sums2[1] / m - mean2 * mean2, 0.0)
    inv2 = lax.rsqrt(var2 + BN_EPS)

    # ---- Pass 3: BN2 normalize on a lane-dense (N*H, W*Cout) view ----
    rows, wide = n * h, w * c_out
    y_wide = y2d.reshape(rows, wide)                    # pure reshape, no transpose
    scale_wide = jnp.tile(inv2, w)[None, :]             # channel pattern repeated W times
    shift_wide = jnp.tile(-mean2 * inv2, w)[None, :]
    r3 = _row_tile(rows, _R3_PREF)
    out_wide = pl.pallas_call(
        _bn2_kernel,
        out_shape=jax.ShapeDtypeStruct((rows, wide), jnp.float32),
        grid=(rows // r3,),
        in_specs=[pl.BlockSpec((r3, wide), lambda i: (i, 0)),
                  pl.BlockSpec((1, wide), lambda i: (0, 0)),
                  pl.BlockSpec((1, wide), lambda i: (0, 0))],
        out_specs=pl.BlockSpec((r3, wide), lambda i: (i, 0)),
        compiler_params=_PARALLEL,
    )(y_wide, scale_wide, shift_wide)

    out = out_wide.reshape(n, h, w, c_out)
    return jnp.transpose(out, (0, 3, 1, 2))             # back to NCHW


# ---- pure-JAX reference (for correctness check only) ----
def _bn_nchw_ref(x):
    mean = jnp.mean(x, axis=(0, 2, 3), keepdims=True)
    var = jnp.mean((x - mean) ** 2, axis=(0, 2, 3), keepdims=True)
    return (x - mean) / jnp.sqrt(var + BN_EPS)


def irmlp_ref(x_nchw, w1_hwio, w2, w3):
    x = x_nchw.astype(jnp.float32)
    y = lax.conv_general_dilated(
        x, w1_hwio, window_strides=(1, 1), padding="SAME",
        dimension_numbers=("NCHW", "HWIO", "NCHW"))
    y = jax.nn.gelu(y, approximate=False)
    y = y + x
    y = _bn_nchw_ref(y)
    y = jnp.einsum("nihw,io->nohw", y, w2)
    y = jax.nn.gelu(y, approximate=False)
    y = jnp.einsum("nihw,io->nohw", y, w3)
    return _bn_nchw_ref(y)


if __name__ == "__main__":
    key = jax.random.PRNGKey(0)
    k1, k2, k3, k4 = jax.random.split(key, 4)

    N, C, H, W = 2, 4, 16, 16       # inp_dim = 4
    OUT = 8                         # out_dim = 8, hidden = 4*inp_dim = 16

    x = jax.random.normal(k1, (N, C, H, W), jnp.float32)
    w1 = jax.random.normal(k2, (3, 3, C, C), jnp.float32) * 0.2   # 3x3, Cin->Cin
    w2 = jax.random.normal(k3, (C, 4 * C), jnp.float32) * 0.2     # 1x1, Cin->4Cin
    w3 = jax.random.normal(k4, (4 * C, OUT), jnp.float32) * 0.2   # 1x1, 4Cin->out

    y = irmlp_forward(x, w1, w2, w3)
    jax.block_until_ready(y)
    assert y.shape == (N, OUT, H, W)

    # Compare against the reference evaluated on the same bf16-quantized
    # x / conv1 weight the kernel consumes (w2/w3 stay f32 in both paths).
    xq = x.astype(jnp.bfloat16).astype(jnp.float32)
    w1q = w1.astype(jnp.bfloat16).astype(jnp.float32)
    y_ref = irmlp_ref(xq, w1q, w2, w3)
    max_err = float(jnp.max(jnp.abs(y - y_ref)))
    if not max_err < 2e-3:
        raise AssertionError(f"kernel/reference mismatch: max abs err {max_err}")

    print("KERNEL_OK")
</pallas_src>

<mosaic_0001>
module attributes {stable_mosaic.version = 11 : i64} {
  func.func @_stage1_kernel(%arg0: i32, %arg1: memref<128x36xbf16, #tpu.memory_space<vmem>>, %arg2: memref<36x4xbf16, #tpu.memory_space<vmem>>, %arg3: memref<128x4xf32, #tpu.memory_space<vmem>>, %arg4: memref<1x2x4xf32, #tpu.memory_space<vmem>>) attributes {dimension_semantics = [#tpu.dimension_semantics<parallel>], iteration_bounds = array<i64: 4>, scalar_prefetch = 0 : i64, scratch_operands = 0 : i64, tpu.core_type = #tpu.core_type<tc>, window_params = [{transform_indices = @transform_0, window_bounds = array<i64: 128, 36>}, {pipeline_mode = #tpu.pipeline_mode<synchronous>, transform_indices = @transform_1, window_bounds = array<i64: 36, 4>}, {transform_indices = @transform_2, window_bounds = array<i64: 128, 4>}, {transform_indices = @transform_3, window_bounds = array<i64: 1, 2, 4>}]} {
    %c0 = arith.constant 0 : index
    %c0_0 = arith.constant 0 : index
    %0 = vector.load %arg1[%c0, %c0_0] : memref<128x36xbf16, #tpu.memory_space<vmem>>, vector<128x36xbf16>
    %c0_1 = arith.constant 0 : index
    %c0_2 = arith.constant 0 : index
    %1 = vector.load %arg2[%c0_1, %c0_2] : memref<36x4xbf16, #tpu.memory_space<vmem>>, vector<36x4xbf16>
    %cst = arith.constant dense<0.000000e+00> : vector<128x4xf32>
    %2 = tpu.matmul %0, %1, %cst {dimension_numbers = #tpu.dot_dimension_numbers<[1], [0], [0], [1], [0, 0, 1, 1], [], []>} : vector<128x36xbf16>, vector<36x4xbf16>, vector<128x4xf32> -> vector<128x4xf32>
    %c0_3 = arith.constant 0 : index
    %c16 = arith.constant 16 : index
    %3 = vector.load %arg1[%c0_3, %c16] : memref<128x36xbf16, #tpu.memory_space<vmem>>, vector<128x4xbf16>
    %4 = arith.extf %3 : vector<128x4xbf16> to vector<128x4xf32>
    %cst_4 = arith.constant 5.000000e-01 : f32
    %5 = vector.broadcast %cst_4 : f32 to vector<128x4xf32>
    %6 = arith.mulf %5, %2 : vector<128x4xf32>
    %cst_5 = arith.constant 0.707106769 : f32
    %7 = vector.broadcast %cst_5 : f32 to vector<128x4xf32>
    %8 = arith.mulf %2, %7 : vector<128x4xf32>
    %cst_6 = arith.constant 0.000000e+00 : f32
    %9 = vector.broadcast %cst_6 : f32 to vector<128x4xf32>
    %10 = arith.cmpf oge, %8, %9 : vector<128x4xf32>
    %cst_7 = arith.constant 1.000000e+00 : f32
    %cst_8 = arith.constant -1.000000e+00 : f32
    %11 = vector.broadcast %cst_7 : f32 to vector<128x4xf32>
    %12 = vector.broadcast %cst_8 : f32 to vector<128x4xf32>
    %13 = arith.select %10, %11, %12 : vector<128x4xi1>, vector<128x4xf32>
    %14 = math.absf %8 : vector<128x4xf32>
    %cst_9 = arith.constant 0.327591091 : f32
    %15 = vector.broadcast %cst_9 : f32 to vector<128x4xf32>
    %16 = arith.mulf %15, %14 : vector<128x4xf32>
    %cst_10 = arith.constant 1.000000e+00 : f32
    %17 = vector.broadcast %cst_10 : f32 to vector<128x4xf32>
    %18 = arith.addf %17, %16 : vector<128x4xf32>
    %cst_11 = arith.constant 1.000000e+00 : f32
    %19 = vector.broadcast %cst_11 : f32 to vector<128x4xf32>
    %20 = arith.divf %19, %18 : vector<128x4xf32>
    %cst_12 = arith.constant 1.06140542 : f32
    %21 = vector.broadcast %cst_12 : f32 to vector<128x4xf32>
    %22 = arith.mulf %20, %21 : vector<128x4xf32>
    %cst_13 = arith.constant -1.45315206 : f32
    %23 = vector.broadcast %cst_13 : f32 to vector<128x4xf32>
    %24 = arith.addf %23, %22 : vector<128x4xf32>
    %25 = arith.mulf %20, %24 : vector<128x4xf32>
    %cst_14 = arith.constant 1.42141378 : f32
    %26 = vector.broadcast %cst_14 : f32 to vector<128x4xf32>
    %27 = arith.addf %26, %25 : vector<128x4xf32>
    %28 = arith.mulf %20, %27 : vector<128x4xf32>
    %cst_15 = arith.constant -0.284496725 : f32
    %29 = vector.broadcast %cst_15 : f32 to vector<128x4xf32>
    %30 = arith.addf %29, %28 : vector<128x4xf32>
    %31 = arith.mulf %20, %30 : vector<128x4xf32>
    %cst_16 = arith.constant 0.254829586 : f32
    %32 = vector.broadcast %cst_16 : f32 to vector<128x4xf32>
    %33 = arith.addf %32, %31 : vector<128x4xf32>
    %34 = arith.mulf %20, %33 : vector<128x4xf32>
    %cst_17 = arith.constant 0.000000e+00 : f32
    %35 = vector.broadcast %cst_17 : f32 to vector<128x4xf32>
    %36 = arith.subf %35, %14 : vector<128x4xf32>
    %37 = arith.mulf %36, %14 : vector<128x4xf32>
    %38 = math.exp %37 : vector<128x4xf32>
    %39 = arith.mulf %34, %38 : vector<128x4xf32>
    %cst_18 = arith.constant 1.000000e+00 : f32
    %40 = vector.broadcast %cst_18 : f32 to vector<128x4xf32>
    %41 = arith.subf %40, %39 : vector<128x4xf32>
    %42 = arith.mulf %13, %41 : vector<128x4xf32>
    %cst_19 = arith.constant 1.000000e+00 : f32
    %43 = vector.broadcast %cst_19 : f32 to vector<128x4xf32>
    %44 = arith.addf %43, %42 : vector<128x4xf32>
    %45 = arith.mulf %6, %44 : vector<128x4xf32>
    %46 = arith.addf %45, %4 : vector<128x4xf32>
    %c0_20 = arith.constant 0 : index
    %c0_21 = arith.constant 0 : index
    %47 = vector.load %arg3[%c0_20, %c0_21] : memref<128x4xf32, #tpu.memory_space<vmem>>, vector<128x4xf32>
    tpu.vector_store %arg3[%c0_20, %c0_21], %46 {strides = array<i32>} : memref<128x4xf32, #tpu.memory_space<vmem>>, vector<128x4xf32>,
    %cst_22 = arith.constant dense<0.000000e+00> : vector<4xf32>
    %48 = vector.multi_reduction <add>, %46, %cst_22 [0] : vector<128x4xf32> to vector<4xf32>
    %49 = vector.shape_cast %48 : vector<4xf32> to vector<1x4xf32>
    %50 = arith.mulf %46, %46 : vector<128x4xf32>
    %cst_23 = arith.constant dense<0.000000e+00> : vector<4xf32>
    %51 = vector.multi_reduction <add>, %50, %cst_23 [0] : vector<128x4xf32> to vector<4xf32>
    %52 = vector.shape_cast %51 : vector<4xf32> to vector<1x4xf32>
    %53 = tpu.concatenate %49, %52 in 0 : vector<1x4xf32>, vector<1x4xf32> -> vector<2x4xf32>
    %c0_24 = arith.constant 0 : index
    %c0_25 = arith.constant 0 : index
    %c0_26 = arith.constant 0 : index
    %54 = vector.load %arg4[%c0_24, %c0_25, %c0_26] : memref<1x2x4xf32, #tpu.memory_space<vmem>>, vector<1x2x4xf32>
    %55 = vector.shape_cast %54 : vector<1x2x4xf32> to vector<2x4xf32>
    %56 = vector.shape_cast %53 : vector<2x4xf32> to vector<1x2x4xf32>
    tpu.vector_store %arg4[%c0_24, %c0_25, %c0_26], %56 {strides = array<i32>} : memref<1x2x4xf32, #tpu.memory_space<vmem>>, vector<1x2x4xf32>,
    return
  }
  func.func @transform_0(%arg0: i32) -> (i32, i32) {
    %c0_i32 = arith.constant 0 : i32
    %c0_i32_0 = arith.constant 0 : i32
    return %arg0, %c0_i32 : i32, i32
  }
  func.func @transform_1(%arg0: i32) -> (i32, i32) {
    %c0_i32 = arith.constant 0 : i32
    %c0_i32_0 = arith.constant 0 : i32
    %c0_i32_1 = arith.constant 0 : i32
    return %c0_i32, %c0_i32_0 : i32, i32
  }
  func.func @transform_2(%arg0: i32) -> (i32, i32) {
    %c0_i32 = arith.constant 0 : i32
    %c0_i32_0 = arith.constant 0 : i32
    return %arg0, %c0_i32 : i32, i32
  }
  func.func @transform_3(%arg0: i32) -> (i32, i32, i32) {
    %c0_i32 = arith.constant 0 : i32
    %c0_i32_0 = arith.constant 0 : i32
    %c0_i32_1 = arith.constant 0 : i32
    return %arg0, %c0_i32, %c0_i32_0 : i32, i32, i32
  }
}

module attributes {stable_mosaic.version = 11 : i64} {
  func.func @_mid_kernel(%arg0: i32, %arg1: memref<128x4xf32, #tpu.memory_space<vmem>>, %arg2: memref<4x16xf32, #tpu.memory_space<vmem>>, %arg3: memref<1x16xf32, #tpu.memory_space<vmem>>, %arg4: memref<16x8xf32, #tpu.memory_space<vmem>>, %arg5: memref<128x8xf32, #tpu.memory_space<vmem>>, %arg6: memref<1x2x8xf32, #tpu.memory_space<vmem>>) attributes {dimension_semantics = [#tpu.dimension_semantics<parallel>], iteration_bounds = array<i64: 4>, scalar_prefetch = 0 : i64, scratch_operands = 0 : i64, tpu.core_type = #tpu.core_type<tc>, window_params = [{transform_indices = @transform_0, window_bounds = array<i64: 128, 4>}, {pipeline_mode = #tpu.pipeline_mode<synchronous>, transform_indices = @transform_1, window_bounds = array<i64: 4, 16>}, {pipeline_mode = #tpu.pipeline_mode<synchronous>, transform_indices = @transform_2, window_bounds = array<i64: 1, 16>}, {pipeline_mode = #tpu.pipeline_mode<synchronous>, transform_indices = @transform_3, window_bounds = array<i64: 16, 8>}, {transform_indices = @transform_4, window_bounds = array<i64: 128, 8>}, {transform_indices = @transform_5, window_bounds = array<i64: 1, 2, 8>}]} {
    %c0 = arith.constant 0 : index
    %c0_0 = arith.constant 0 : index
    %0 = vector.load %arg1[%c0, %c0_0] : memref<128x4xf32, #tpu.memory_space<vmem>>, vector<128x4xf32>
    %c0_1 = arith.constant 0 : index
    %c0_2 = arith.constant 0 : index
    %1 = vector.load %arg2[%c0_1, %c0_2] : memref<4x16xf32, #tpu.memory_space<vmem>>, vector<4x16xf32>
    %cst = arith.constant dense<0.000000e+00> : vector<128x16xf32>
    %2 = tpu.matmul %0, %1, %cst {dimension_numbers = #tpu.dot_dimension_numbers<[1], [0], [0], [1], [0, 0, 1, 1], [], []>} : vector<128x4xf32>, vector<4x16xf32>, vector<128x16xf32> -> vector<128x16xf32>
    %c0_3 = arith.constant 0 : index
    %c0_4 = arith.constant 0 : index
    %3 = vector.load %arg3[%c0_3, %c0_4] : memref<1x16xf32, #tpu.memory_space<vmem>>, vector<1x16xf32>
    %4 = vector.broadcast %3 : vector<1x16xf32> to vector<128x16xf32>
    %5 = arith.addf %2, %4 : vector<128x16xf32>
    %cst_5 = arith.constant 5.000000e-01 : f32
    %6 = vector.broadcast %cst_5 : f32 to vector<128x16xf32>
    %7 = arith.mulf %6, %5 : vector<128x16xf32>
    %cst_6 = arith.constant 0.707106769 : f32
    %8 = vector.broadcast %cst_6 : f32 to vector<128x16xf32>
    %9 = arith.mulf %5, %8 : vector<128x16xf32>
    %cst_7 = arith.constant 0.000000e+00 : f32
    %10 = vector.broadcast %cst_7 : f32 to vector<128x16xf32>
    %11 = arith.cmpf oge, %9, %10 : vector<128x16xf32>
    %cst_8 = arith.constant 1.000000e+00 : f32
    %cst_9 = arith.constant -1.000000e+00 : f32
    %12 = vector.broadcast %cst_8 : f32 to vector<128x16xf32>
    %13 = vector.broadcast %cst_9 : f32 to vector<128x16xf32>
    %14 = arith.select %11, %12, %13 : vector<128x16xi1>, vector<128x16xf32>
    %15 = math.absf %9 : vector<128x16xf32>
    %cst_10 = arith.constant 0.327591091 : f32
    %16 = vector.broadcast %cst_10 : f32 to vector<128x16xf32>
    %17 = arith.mulf %16, %15 : vector<128x16xf32>
    %cst_11 = arith.constant 1.000000e+00 : f32
    %18 = vector.broadcast %cst_11 : f32 to vector<128x16xf32>
    %19 = arith.addf %18, %17 : vector<128x16xf32>
    %cst_12 = arith.constant 1.000000e+00 : f32
    %20 = vector.broadcast %cst_12 : f32 to vector<128x16xf32>
    %21 = arith.divf %20, %19 : vector<128x16xf32>
    %cst_13 = arith.constant 1.06140542 : f32
    %22 = vector.broadcast %cst_13 : f32 to vector<128x16xf32>
    %23 = arith.mulf %21, %22 : vector<128x16xf32>
    %cst_14 = arith.constant -1.45315206 : f32
    %24 = vector.broadcast %cst_14 : f32 to vector<128x16xf32>
    %25 = arith.addf %24, %23 : vector<128x16xf32>
    %26 = arith.mulf %21, %25 : vector<128x16xf32>
    %cst_15 = arith.constant 1.42141378 : f32
    %27 = vector.broadcast %cst_15 : f32 to vector<128x16xf32>
    %28 = arith.addf %27, %26 : vector<128x16xf32>
    %29 = arith.mulf %21, %28 : vector<128x16xf32>
    %cst_16 = arith.constant -0.284496725 : f32
    %30 = vector.broadcast %cst_16 : f32 to vector<128x16xf32>
    %31 = arith.addf %30, %29 : vector<128x16xf32>
    %32 = arith.mulf %21, %31 : vector<128x16xf32>
    %cst_17 = arith.constant 0.254829586 : f32
    %33 = vector.broadcast %cst_17 : f32 to vector<128x16xf32>
    %34 = arith.addf %33, %32 : vector<128x16xf32>
    %35 = arith.mulf %21, %34 : vector<128x16xf32>
    %cst_18 = arith.constant 0.000000e+00 : f32
    %36 = vector.broadcast %cst_18 : f32 to vector<128x16xf32>
    %37 = arith.subf %36, %15 : vector<128x16xf32>
    %38 = arith.mulf %37, %15 : vector<128x16xf32>
    %39 = math.exp %38 : vector<128x16xf32>
    %40 = arith.mulf %35, %39 : vector<128x16xf32>
    %cst_19 = arith.constant 1.000000e+00 : f32
    %41 = vector.broadcast %cst_19 : f32 to vector<128x16xf32>
    %42 = arith.subf %41, %40 : vector<128x16xf32>
    %43 = arith.mulf %14, %42 : vector<128x16xf32>
    %cst_20 = arith.constant 1.000000e+00 : f32
    %44 = vector.broadcast %cst_20 : f32 to vector<128x16xf32>
    %45 = arith.addf %44, %43 : vector<128x16xf32>
    %46 = arith.mulf %7, %45 : vector<128x16xf32>
    %c0_21 = arith.constant 0 : index
    %c0_22 = arith.constant 0 : index
    %47 = vector.load %arg4[%c0_21, %c0_22] : memref<16x8xf32, #tpu.memory_space<vmem>>, vector<16x8xf32>
    %cst_23 = arith.constant dense<0.000000e+00> : vector<128x8xf32>
    %48 = tpu.matmul %46, %47, %cst_23 {dimension_numbers = #tpu.dot_dimension_numbers<[1], [0], [0], [1], [0, 0, 1, 1], [], []>} : vector<128x16xf32>, vector<16x8xf32>, vector<128x8xf32> -> vector<128x8xf32>
    %c0_24 = arith.constant 0 : index
    %c0_25 = arith.constant 0 : index
    %49 = vector.load %arg5[%c0_24, %c0_25] : memref<128x8xf32, #tpu.memory_space<vmem>>, vector<128x8xf32>
    tpu.vector_store %arg5[%c0_24, %c0_25], %48 {strides = array<i32>} : memref<128x8xf32, #tpu.memory_space<vmem>>, vector<128x8xf32>,
    %cst_26 = arith.constant dense<0.000000e+00> : vector<8xf32>
    %50 = vector.multi_reduction <add>, %48, %cst_26 [0] : vector<128x8xf32> to vector<8xf32>
    %51 = vector.shape_cast %50 : vector<8xf32> to vector<1x8xf32>
    %52 = arith.mulf %48, %48 : vector<128x8xf32>
    %cst_27 = arith.constant dense<0.000000e+00> : vector<8xf32>
    %53 = vector.multi_reduction <add>, %52, %cst_27 [0] : vector<128x8xf32> to vector<8xf32>
    %54 = vector.shape_cast %53 : vector<8xf32> to vector<1x8xf32>
    %55 = tpu.concatenate %51, %54 in 0 : vector<1x8xf32>, vector<1x8xf32> -> vector<2x8xf32>
    %c0_28 = arith.constant 0 : index
    %c0_29 = arith.constant 0 : index
    %c0_30 = arith.constant 0 : index
    %56 = vector.load %arg6[%c0_28, %c0_29, %c0_30] : memref<1x2x8xf32, #tpu.memory_space<vmem>>, vector<1x2x8xf32>
    %57 = vector.shape_cast %56 : vector<1x2x8xf32> to vector<2x8xf32>
    %58 = vector.shape_cast %55 : vector<2x8xf32> to vector<1x2x8xf32>
    tpu.vector_store %arg6[%c0_28, %c0_29, %c0_30], %58 {strides = array<i32>} : memref<1x2x8xf32, #tpu.memory_space<vmem>>, vector<1x2x8xf32>,
    return
  }
  func.func @transform_0(%arg0: i32) -> (i32, i32) {
    %c0_i32 = arith.constant 0 : i32
    %c0_i32_0 = arith.constant 0 : i32
    return %arg0, %c0_i32 : i32, i32
  }
  func.func @transform_1(%arg0: i32) -> (i32, i32) {
    %c0_i32 = arith.constant 0 : i32
    %c0_i32_0 = arith.constant 0 : i32
    %c0_i32_1 = arith.constant 0 : i32
    return %c0_i32, %c0_i32_0 : i32, i32
  }
  func.func @transform_2(%arg0: i32) -> (i32, i32) {
    %c0_i32 = arith.constant 0 : i32
    %c0_i32_0 = arith.constant 0 : i32
    %c0_i32_1 = arith.constant 0 : i32
    return %c0_i32, %c0_i32_0 : i32, i32
  }
  func.func @transform_3(%arg0: i32) -> (i32, i32) {
    %c0_i32 = arith.constant 0 : i32
    %c0_i32_0 = arith.constant 0 : i32
    %c0_i32_1 = arith.constant 0 : i32
    return %c0_i32, %c0_i32_0 : i32, i32
  }
  func.func @transform_4(%arg0: i32) -> (i32, i32) {
    %c0_i32 = arith.constant 0 : i32
    %c0_i32_0 = arith.constant 0 : i32
    return %arg0, %c0_i32 : i32, i32
  }
  func.func @transform_5(%arg0: i32) -> (i32, i32, i32) {
    %c0_i32 = arith.constant 0 : i32
    %c0_i32_0 = arith.constant 0 : i32
    %c0_i32_1 = arith.constant 0 : i32
    return %arg0, %c0_i32, %c0_i32_0 : i32, i32, i32
  }
}

module attributes {stable_mosaic.version = 11 : i64} {
  func.func @_bn2_kernel(%arg0: i32, %arg1: memref<8x128xf32, #tpu.memory_space<vmem>>, %arg2: memref<1x128xf32, #tpu.memory_space<vmem>>, %arg3: memref<1x128xf32, #tpu.memory_space<vmem>>, %arg4: memref<8x128xf32, #tpu.memory_space<vmem>>) attributes {dimension_semantics = [#tpu.dimension_semantics<parallel>], iteration_bounds = array<i64: 4>, scalar_prefetch = 0 : i64, scratch_operands = 0 : i64, tpu.core_type = #tpu.core_type<tc>, window_params = [{transform_indices = @transform_0, window_bounds = array<i64: 8, 128>}, {pipeline_mode = #tpu.pipeline_mode<synchronous>, transform_indices = @transform_1, window_bounds = array<i64: 1, 128>}, {pipeline_mode = #tpu.pipeline_mode<synchronous>, transform_indices = @transform_2, window_bounds = array<i64: 1, 128>}, {transform_indices = @transform_3, window_bounds = array<i64: 8, 128>}]} {
    %c0 = arith.constant 0 : index
    %c0_0 = arith.constant 0 : index
    %0 = vector.load %arg1[%c0, %c0_0] : memref<8x128xf32, #tpu.memory_space<vmem>>, vector<8x128xf32>
    %c0_1 = arith.constant 0 : index
    %c0_2 = arith.constant 0 : index
    %1 = vector.load %arg2[%c0_1, %c0_2] : memref<1x128xf32, #tpu.memory_space<vmem>>, vector<1x128xf32>
    %2 = vector.broadcast %1 : vector<1x128xf32> to vector<8x128xf32>
    %3 = arith.mulf %0, %2 : vector<8x128xf32>
    %c0_3 = arith.constant 0 : index
    %c0_4 = arith.constant 0 : index
    %4 = vector.load %arg3[%c0_3, %c0_4] : memref<1x128xf32, #tpu.memory_space<vmem>>, vector<1x128xf32>
    %5 = vector.broadcast %4 : vector<1x128xf32> to vector<8x128xf32>
    %6 = arith.addf %3, %5 : vector<8x128xf32>
    %c0_5 = arith.constant 0 : index
    %c0_6 = arith.constant 0 : index
    %7 = vector.load %arg4[%c0_5, %c0_6] : memref<8x128xf32, #tpu.memory_space<vmem>>, vector<8x128xf32>
    tpu.vector_store %arg4[%c0_5, %c0_6], %6 {strides = array<i32>} : memref<8x128xf32, #tpu.memory_space<vmem>>, vector<8x128xf32>,
    return
  }
  func.func @transform_0(%arg0: i32) -> (i32, i32) {
    %c0_i32 = arith.constant 0 : i32
    %c0_i32_0 = arith.constant 0 : i32
    return %arg0, %c0_i32 : i32, i32
  }
  func.func @transform_1(%arg0: i32) -> (i32, i32) {
    %c0_i32 = arith.constant 0 : i32
    %c0_i32_0 = arith.constant 0 : i32
    %c0_i32_1 = arith.constant 0 : i32
    return %c0_i32, %c0_i32_0 : i32, i32
  }
  func.func @transform_2(%arg0: i32) -> (i32, i32) {
    %c0_i32 = arith.constant 0 : i32
    %c0_i32_0 = arith.constant 0 : i32
    %c0_i32_1 = arith.constant 0 : i32
    return %c0_i32, %c0_i32_0 : i32, i32
  }
  func.func @transform_3(%arg0: i32) -> (i32, i32) {
    %c0_i32 = arith.constant 0 : i32
    %c0_i32_0 = arith.constant 0 : i32
    return %arg0, %c0_i32 : i32, i32
  }
}

</mosaic_0001>

<bundles_post_ra>
// kernel: tile.13
= control target key start
LH: loop header
LB: loop body
LE: loop exit
PB: predicated region body
PF: predicated region fallthrough
CT: control target
= control target key end

     0   :  { %s28_s0 = inlined_call_operand.vmem [shape: f32[8], index: 0, kind: input, shape index: {}]   ;;  %s29_s1 = inlined_call_operand.vmem [shape: f32[16,8], index: 1, kind: output, shape index: {}]  }
   0x1   :  { %v4_v0 = vld [vmem:[%s28_s0] ss:$0 sm:$0xff] }
   0x2   :  { %5 = vst [vmem:[%s29_s1] sm:$0xff] %v4_v0  ;;  %8 = vst [vmem:[%s29_s1 + $0x8] sm:$0xff] %v4_v0 }

// kernel: tile.14
= control target key start
LH: loop header
LB: loop body
LE: loop exit
PB: predicated region body
PF: predicated region fallthrough
CT: control target
= control target key end

     0   :  { %s131_s10 = smov 120   ;;  %s132_s11 = smov 104   ;;  %vm3_vm0 = vcmask 64512   ;;  %vm9_vm1 = vcmask 1048512   ;;  %vm15_vm2 = vcmask 982912   ;;  %vm21_vm3 = vcmask 917312   ;;  %s207_s0 = inlined_call_operand.vmem [shape: f32[16,8], index: 0, kind: input, shape index: {}]   ;;  %s208_s1 = inlined_call_operand.vmem [shape: f32[1,128], index: 1, kind: output, shape index: {}]  }
   0x1   :  { %v101_v0 = vld [vmem:[%s207_s0 + $0xf] sm:$0x1]   ;;  %v103_v1 = vld [vmem:[%s207_s0 + $0xd] sm:$0x1]   ;;  %v102_v2 = vld [vmem:[%s207_s0 + $0xe] sm:$0x1]  }
   0x2   :  { %7 = vrot.lane.b32.xlu0 %v101_v0, %s131_s10  ;;  %19 = vrot.lane.b32.xlu1 %v103_v1, %s132_s11  ;;  %v104_v3 = vld [vmem:[%s207_s0 + $0xc] sm:$0x1]   ;;  %s133_s16 = smov 112   ;;  %s134_s17 = smov 96   ;;  %v105_v4 = vld [vmem:[%s207_s0 + $0xb] sm:$0x1]  }
   0x3   :  { %v106_v5 = vld [vmem:[%s207_s0 + $0xa] sm:$0x1]   ;;  %v2_v6 = vld [vmem:[%s207_s0] sm:$0x1]   ;;  %s135_s24 = smov 88   ;;  %s136_s25 = smov 80  }
   0x4   :  { %4 = vst.msk [vmem:[#allocation0] sm:$0x1] %vm3_vm0, %v2_v6   ;;  %v107_v7 = vld [vmem:[%s207_s0 + $0x9] sm:$0x1]   ;;  %v108_v8 = vld [vmem:[%s207_s0 + $0x8] sm:$0x1]  }
   0x5   :  { %s137_s30 = smov 72   ;;  %s138_s2 = smov 64   ;;  %v109_v9 = vld [vmem:[%s207_s0 + $0x7] sm:$0x1]   ;;  %v110_v10 = vld [vmem:[%s207_s0 + $0x6] sm:$0x1]  }
   0x6   :  { %13 = vrot.lane.b32.xlu0 %v102_v2, %s133_s16  ;;  %25 = vrot.lane.b32.xlu1 %v104_v3, %s134_s17  ;;  %s139_s7 = smov 56   ;;  %s140_s8 = smov 48   ;;  %v111_v11 = vld [vmem:[%s207_s0 + $0x5] sm:$0x1]   ;;  %v112_v12 = vld [vmem:[%s207_s0 + $0x4] sm:$0x1]  }
   0x7   :  { %s141_s13 = smov 40   ;;  %s142_s14 = smov 32   ;;  %v113_v13 = vld [vmem:[%s207_s0 + $0x3] sm:$0x1]   ;;  %v114_v14 = vld [vmem:[%s207_s0 + $0x2] sm:$0x1]  }
   0x8   :  { %s143_s19 = smov 24   ;;  %s144_s20 = smov 16   ;;  %v115_v15 = vld [vmem:[%s207_s0 + $0x1] sm:$0x1]   ;;  %vm27_vm4 = vcmask 851712   ;;  %vm33_vm5 = vcmask 786112  }
   0x9   :  { %s145_s0 = smov 8   ;;  %vm39_vm6 = vcmask 720512   ;;  %vm45_vm7 = vcmask 654912   ;;  %vm51_vm8 = vcmask 589312   ;;  %vm57_vm9 = vcmask 523712  }
   0xa   :  { %31 = vrot.lane.b32.xlu0 %v105_v4, %s135_s24  ;;  %37 = vrot.lane.b32.xlu1 %v106_v5, %s136_s25  ;;  %vm63_vm10 = vcmask 458112   ;;  %vm69_vm11 = vcmask 392512   ;;  %vm75_vm12 = vcmask 326912   ;;  %vm81_vm13 = vcmask 261312  }
   0xb   :  { %vm87_vm14 = vcmask 195712   ;;  %vm93_vm15 = vcmask 130112  }
   0xe   :  { %43 = vrot.lane.b32.xlu0 %v107_v7, %s137_s30  ;;  %49 = vrot.lane.b32.xlu1 %v108_v8, %s138_s2 }
  0x12   :  { %55 = vrot.lane.b32.xlu0 %v109_v9, %s139_s7  ;;  %61 = vrot.lane.b32.xlu1 %v110_v10, %s140_s8 }
  0x16   :  { %67 = vrot.lane.b32.xlu0 %v111_v11, %s141_s13  ;;  %73 = vrot.lane.b32.xlu1 %v112_v12, %s142_s14 }
  0x1a   :  { %79 = vrot.lane.b32.xlu0 %v113_v13, %s143_s19  ;;  %85 = vrot.lane.b32.xlu1 %v114_v14, %s144_s20 }
  0x1e   :  { %91 = vrot.lane.b32.xlu0 %v115_v15, %s145_s0 }
  0x74   :  { %v8_v16 = vpop.permute.xlu0 %7   ;;  %v20_v17 = vpop.permute.xlu1 %19  }
  0x75   :  { %10 = vst.msk [vmem:[#allocation0] sm:$0x1] %vm9_vm1, %v8_v16  }
  0x78   :  { %v14_v18 = vpop.permute.xlu0 %13   ;;  %v26_v19 = vpop.permute.xlu1 %25  }
  0x79   :  { %16 = vst.msk [vmem:[#allocation0] sm:$0x1] %vm15_vm2, %v14_v18  }
  0x7a   :  { %22 = vst.msk [vmem:[#allocation0] sm:$0x1] %vm21_vm3, %v20_v17  }
  0x7b   :  { %28 = vst.msk [vmem:[#allocation0] sm:$0x1] %vm27_vm4, %v26_v19  }
  0x7c   :  { %v32_v20 = vpop.permute.xlu0 %31   ;;  %v38_v21 = vpop.permute.xlu1 %37  }
  0x7d   :  { %34 = vst.msk [vmem:[#allocation0] sm:$0x1] %vm33_vm5, %v32_v20  }
  0x7e   :  { %40 = vst.msk [vmem:[#allocation0] sm:$0x1] %vm39_vm6, %v38_v21  }
  0x80   :  { %v44_v22 = vpop.permute.xlu0 %43   ;;  %v50_v23 = vpop.permute.xlu1 %49  }
  0x81   :  { %46 = vst.msk [vmem:[#allocation0] sm:$0x1] %vm45_vm7, %v44_v22  }
  0x82   :  { %52 = vst.msk [vmem:[#allocation0] sm:$0x1] %vm51_vm8, %v50_v23  }
  0x84   :  { %v56_v24 = vpop.permute.xlu0 %55   ;;  %v62_v25 = vpop.permute.xlu1 %61  }
  0x85   :  { %58 = vst.msk [vmem:[#allocation0] sm:$0x1] %vm57_vm9, %v56_v24  }
  0x86   :  { %64 = vst.msk [vmem:[#allocation0] sm:$0x1] %vm63_vm10, %v62_v25  }
  0x88   :  { %v68_v26 = vpop.permute.xlu0 %67   ;;  %v74_v27 = vpop.permute.xlu1 %73  }
  0x89   :  { %70 = vst.msk [vmem:[#allocation0] sm:$0x1] %vm69_vm11, %v68_v26  }
  0x8a   :  { %76 = vst.msk [vmem:[#allocation0] sm:$0x1] %vm75_vm12, %v74_v27  }
  0x8c   :  { %v80_v28 = vpop.permute.xlu0 %79   ;;  %v86_v29 = vpop.permute.xlu1 %85  }
  0x8d   :  { %82 = vst.msk [vmem:[#allocation0] sm:$0x1] %vm81_vm13, %v80_v28  }
  0x8e   :  { %88 = vst.msk [vmem:[#allocation0] sm:$0x1] %vm87_vm14, %v86_v29  }
  0x90   :  { %v92_v30 = vpop.permute.xlu0 %91  }
  0x91   :  { %94 = vst.msk [vmem:[#allocation0] sm:$0x1] %vm93_vm15, %v92_v30  }
  0x98   :  { %v98_v31 = vld [vmem:[#allocation0] sm:$0x1] }
  0x99   :  { %100 = vst [vmem:[%s208_s1] sm:$0x1] %v98_v31 }

// kernel: irmlp_forward.5
= control target key start
LH: loop header
LB: loop body
LE: loop exit
PB: predicated region body
PF: predicated region fallthrough
CT: control target
= control target key end

     0   :  { %s260_s12 = smov 0   ;;  %s296_s0 = inlined_call_operand.vmem [shape: f32[32,128], index: 0, kind: input, shape index: {}]   ;;  %s297_s1 = inlined_call_operand.vmem [shape: f32[1,128], index: 1, kind: input, shape index: {}]   ;;  %s298_s2 = inlined_call_operand.vmem [shape: f32[1,128], index: 2, kind: input, shape index: {}]   ;;  %s299_s3 = inlined_call_operand.vmem [shape: f32[32,128], index: 3, kind: output, shape index: {}]  }
   0x1 LB: > { %s237_s13 = sadd.s32 4294967295, %s262_s12   ;;  %p241_p0 = scmp.ge.s32.totalorder %s262_s12, 1  ;;  %s262_s12 = sphi %s260_s12, %s13_s12  }
   0x2   : > { %p136_p1 = scmp.lt.s32.totalorder %s262_s12, 5 }
   0x4   : > { %p137_p2 = pnand %p241_p0, %p136_p1 }
   0x5   : > { %p158_p3 = scmp.lt.s32.totalorder (!%p137_p2), %s237_s13, 3  ;;  %v244_v0 = vld [vmem:[%s297_s1] ss:$0 sm:$0xff] (!%p137_p2) }
   0x6   : > { %140 = sbr.rel (%p137_p2) target bundleno = 22 (0x16), region = 32  ;;  %v245_v2 = vld [vmem:[%s298_s2] ss:$0 sm:$0xff] (!%p137_p2) }
   0xd   : > { %s301_s13 = smov (!%p158_p3, %s237_s13), 3 }
   0xe   : > { %s242_s14 = sshll.u32 %s301_s13, 3 }
   0xf   : > { %s161_s19 = scalar_lea.vmem %s296_s0, %s242_s14  ;;  %s165_s24 = scalar_lea.vmem %s299_s3, %s242_s14 }
  0x10   : > { %v166_v1 = vld [vmem:[%s161_s19] sm:$0xff] }
  0x11   : > { %v174_v3 = vmul.f32 %v244_v0, %v166_v1 }
  0x13   : > { %v182_v4 = vadd.f32 %v245_v2, %v174_v3 }
  0x15   : > { %183 = vst [vmem:[%s165_s24] sm:$0xff] %v182_v4 }
  0x16 PF: > { %s13_s12 = sadd.s32 1, %s262_s12  }
  0x17   : > { %p10_p4 = scmp.ge.s32.totalorder %s13_s12, 6  }
  0x19   :  { %12 = sbr.rel (!%p10_p4) target bundleno = 1 (0x1), region = 62 }

// kernel: irmlp_forward.3
= control target key start
LH: loop header
LB: loop body
LE: loop exit
PB: predicated region body
PF: predicated region fallthrough
CT: control target
= control target key end

     0   :  { %s1316_s12 = smov 0   ;;  %s1795_s0 = inlined_call_operand.vmem [shape: bf16[512,36], index: 0, kind: input, shape index: {}]   ;;  %s1796_s1 = inlined_call_operand.vmem [shape: bf16[36,4], index: 1, kind: input, shape index: {}]   ;;  %s1797_s2 = inlined_call_operand.vmem [shape: f32[512,4], index: 2, kind: output, shape index: {0}]   ;;  %s1798_s3 = inlined_call_operand.vmem [shape: f32[4,2,4], index: 3, kind: output, shape index: {1}]  }
   0x1 LB: > { %s1322_s13 = sadd.s32 4294967295, %s1292_s12   ;;  %p1118_p0 = scmp.ge.s32.totalorder %s1292_s12, 1  ;;  %s1292_s12 = sphi %s1316_s12, %s14_s12  }
   0x2   : > { %p141_p1 = scmp.lt.s32.totalorder %s1292_s12, 5 }
   0x4   : > { %p142_p2 = pnand %p1118_p0, %p141_p1 }
   0x6   : > { %145 = sbr.rel (%p142_p2) target bundleno = 392 (0x188), region = 28 }
   0xd   : > { %v1201_v0 = vld [vmem:[%s1796_s1] sm:$0xff]   ;;  %v1202_v1 = vld [vmem:[%s1796_s1 + $0x8] sm:$0xff]   ;;  %s1119_s18 = sshll.u32 %s1322_s13, 4  ;;  %v1203_v2 = vld [vmem:[%s1796_s1 + $0x10] ss:$0 sps:$4 sm:$0x33]  }
   0xe   : > { %1156 = vmatprep.subr.bf16.mxu0 %v1201_v0  ;;  %1178 = vmatprep.subr.bf16.mxu1 %v1201_v0  ;;  %p170_p3 = scmp.lt.s32.totalorder %s1119_s18, 63  ;;  %vm287_vm0 = vcmask 1041408   ;;  %vm262_vm1 = vcmask 293888   ;;  %s1294_s25 = smov 112   ;;  %v1799_v37 = vmov -1.0  }
   0xf   : > { %1157 = vmatpush3.bf16.msra.mxu0 %v1201_v0  ;;  %1181 = vmatpush3.bf16.msra.mxu1 %v1201_v0  ;;  %v289_v3 = vsel %vm287_vm0, %v1203_v2, 0  ;;  %p181_p4 = scmp.lt.s32.totalorder %s1322_s13, 3 }
  0x10   : > { %1158 = vmatprep.subr.bf16.mxu0 %v1202_v1  ;;  %1179 = vmatprep.subr.bf16.mxu1 %v1202_v1  ;;  %s1844_s18 = smov (!%p170_p3, %s1119_s18), 63 }
  0x11   : > { %s1120_s21 = sshll.u32 %s1844_s18, 2  ;;  %s1122_s26 = sshll.u32 %s1844_s18, 3 }
  0x12   : > { %s173_s24 = scalar_lea.vmem %s1795_s0, %s1120_s21  ;;  %s1532_s29 = scalar_lea.vmem %s1797_s2, %s1122_s26 }
  0x13   : > { %1159 = vmatpush3.bf16.msra.mxu0 %v1202_v1  ;;  %1182 = vmatpush3.bf16.msra.mxu1 %v1202_v1  ;;  %v186_v4 = vld [vmem:[%s173_s24] sm:$0xff]   ;;  %v188_v6 = vld [vmem:[%s173_s24 + $0x8] sm:$0xff]   ;;  %v190_v8 = vld [vmem:[%s173_s24 + $0x10] sm:$0xff]   ;;  %s1846_s13 = smov (!%p181_p4, %s1322_s13), 3 }
  0x14   : > { %1184 = vmatprep.subr.msk.bf16.mxu0 %vm287_vm0, %v1203_v2  ;;  %1185 = vmatprep.subr.msk.bf16.mxu1 %vm287_vm0, %v1203_v2  ;;  %v194_v5 = vld [vmem:[%s173_s24 + $0x20] sm:$0xff]   ;;  %v196_v7 = vld [vmem:[%s173_s24 + $0x28] sm:$0xff]   ;;  %v198_v9 = vld [vmem:[%s173_s24 + $0x30] sm:$0xff]   ;;  %v388_v10 = vunpack.c.l.bf16 %v186_v4  ;;  %v389_v11 = vunpack.c.h.bf16 %v186_v4  ;;  %v391_v12 = vunpack.c.h.bf16 %v188_v6  ;;  %v390_v16 = vunpack.c.l.bf16 %v188_v6  ;;  %s1123_s30 = sshll.u32 %s1846_s13, 1 }
  0x15   : > { %1162 = vmatprep.mubr.msk.bf16.mxu0 %vm262_vm1, %v186_v4  ;;  %1170 = vmatprep.mubr.msk.bf16.mxu1 %vm262_vm1, %v194_v5  ;;  %v192_v14 = vld [vmem:[%s173_s24 + $0x18] sm:$0xff]   ;;  %v392_v17 = vunpack.c.l.bf16 %v190_v8  ;;  %v393_v18 = vunpack.c.h.bf16 %v190_v8  ;;  %v396_v20 = vunpack.c.l.bf16 %v194_v5  ;;  %v397_v22 = vunpack.c.h.bf16 %v194_v5  ;;  %s184_s6 = scalar_lea.vmem %s1798_s3, %s1123_s30 }
  0x16   : > { %v1196_v13 = vpack.i.bf16 %v389_v11, %v388_v10  ;;  %v200_v15 = vld [vmem:[%s173_s24 + $0x38] sm:$0xff]   ;;  %858 = vrot.lane.b32.xlu1 %v391_v12, %s1294_s25  ;;  %v394_v19 = vunpack.c.l.bf16 %v192_v14  ;;  %v395_v21 = vunpack.c.h.bf16 %v192_v14  ;;  %v398_v23 = vunpack.c.l.bf16 %v196_v7 }
  0x17   : > { %1161 = vmatpush3.bf16.msra.mxu0 %v289_v3  ;;  %1183 = vmatpush3.bf16.msra.mxu1 %v289_v3  ;;  %v399_v24 = vunpack.c.h.bf16 %v196_v7  ;;  %v400_v25 = vunpack.c.l.bf16 %v198_v9  ;;  %v401_v26 = vunpack.c.h.bf16 %v198_v9  ;;  %v402_v27 = vunpack.c.l.bf16 %v200_v15 }
  0x18   : > { %1197 = vrot.lane.b32.xlu0 %v1196_v13, %s1294_s25  ;;  %v403_v28 = vunpack.c.h.bf16 %v200_v15  ;;  %vm916_vm0 = vcmask 31744  }
  0x1a   : > { %1163 = vmatmul.mubr.msk.bf16.vlgmr.msra.gmra.mrb[0].mxu0 %vm262_vm1, %v188_v6  ;;  %1171 = vmatmul.mubr.msk.bf16.vlgmr.msra.gmra.mrb[0].mxu1 %vm262_vm1, %v196_v7 }
  0x1b   : > { %1166 = vmatprep.mubr.msk.bf16.mxu0 %vm262_vm1, %v190_v8  ;;  %1174 = vmatprep.mubr.msk.bf16.mxu1 %vm262_vm1, %v198_v9 }
  0x1c   : > { %856 = vrot.lane.b32.xlu0 %v390_v16, %s1294_s25  ;;  %860 = vrot.lane.b32.xlu1 %v392_v17, %s1294_s25 }
  0x20   : > { %862 = vrot.lane.b32.xlu0 %v393_v18, %s1294_s25  ;;  %864 = vrot.lane.b32.xlu1 %v394_v19, %s1294_s25 }
  0x22   : > { %1167 = vmatmul.mubr.msk.bf16.gmra.mrb[4].mxu0 %vm262_vm1, %v192_v14  ;;  %1175 = vmatmul.mubr.msk.bf16.gmra.mrb[4].mxu1 %vm262_vm1, %v200_v15 }
  0x24   : > { %866 = vrot.lane.b32.xlu0 %v395_v21, %s1294_s25  ;;  %868 = vrot.lane.b32.xlu1 %v396_v20, %s1294_s25 }
  0x28   : > { %870 = vrot.lane.b32.xlu0 %v397_v22, %s1294_s25  ;;  %872 = vrot.lane.b32.xlu1 %v398_v23, %s1294_s25 }
  0x2c   : > { %874 = vrot.lane.b32.xlu0 %v399_v24, %s1294_s25  ;;  %876 = vrot.lane.b32.xlu1 %v400_v25, %s1294_s25 }
  0x30   : > { %878 = vrot.lane.b32.xlu0 %v401_v26, %s1294_s25  ;;  %880 = vrot.lane.b32.xlu1 %v402_v27, %s1294_s25 }
  0x34   : > { %882 = vrot.lane.b32.xlu0 %v403_v28, %s1294_s25 }
  0x8a   : > { %v1364_v53 = vpop.permute.xlu0 %1197 }
  0xed   : > { %v1164_v29 = vpop.f32.mrb[0].mxu0  ;;  %v1350_v30 = vpop.f32.mrb[0].mxu1 }
  0xee   : > { %1807 = vst [vmem:[#allocation2_spill] sm:$0xff] %v1350_v30  ;;  %v422_v31 = vmul.f32 0.70710677, %v1164_v29  ;;  %v430_v32 = vmul.f32 0.70710677, %v1350_v30  ;;  %v325_v33 = vpop.f32.mrb[1].mxu0 }
  0xef   : > { %v357_v34 = vpop.f32.mrb[1].mxu1  ;;  %v420_v39 = vmul.f32 0.70710677, %v325_v33  ;;  %v1356_v40 = vpop.f32.mrb[2].mxu0  ;;  %v1366_v54 = vmul.f32 0.5, %v1164_v29  ;;  %v1371_v56 = vmul.f32 0.5, %v325_v33 }
  0xf0   : > { %v470_v35 = vand.u32 2147483647, %v422_v31  ;;  %vm446_vm2 = vcmp.ge.f32.partialorder %v430_v32, 0.0  ;;  %v478_v36 = vand.u32 2147483647, %v430_v32  ;;  %vm438_vm3 = vcmp.ge.f32.partialorder %v422_v31, 0.0 }
  0xf1   : > { %v1354_v38 = vsel %vm446_vm2, 1.0, %v1799_v37  ;;  %v468_v44 = vand.u32 2147483647, %v420_v39  ;;  %v428_v45 = vmul.f32 0.70710677, %v357_v34  ;;  %v1358_v47 = vpop.f32.mrb[2].mxu1 }
  0xf2   : > { %1808 = vst [vmem:[#allocation3_spill] sm:$0xff] %v1354_v38  ;;  %v486_v41 = vmul.f32 0.3275911, %v470_v35  ;;  %v694_v42 = vsub.f32 0.0, %v470_v35  ;;  %v702_v43 = vsub.f32 0.0, %v478_v36  ;;  %1809 = vst [vmem:[#allocation4_spill] sm:$0xff] %v1358_v47 }
  0xf3   : > { %v494_v46 = vmul.f32 0.3275911, %v478_v36  ;;  %v1360_v48 = vpop.f32.mrb[3].mxu0  ;;  %v484_v50 = vmul.f32 0.3275911, %v468_v44  ;;  %v692_v51 = vsub.f32 0.0, %v468_v44 }
  0xf4   : > { %v710_v49 = vmul.f32 %v694_v42, %v470_v35  ;;  %v1362_v52 = vpop.f32.mrb[3].mxu1  ;;  %v1369_v55 = vsel %vm438_vm3, 1.0, %v1799_v37  ;;  %v502_v58 = vadd.f32 1.0, %v486_v41  ;;  %v718_v59 = vmul.f32 %v702_v43, %v478_v36 }
  0xf5   : > { %1810 = vst [vmem:[#allocation5_spill] sm:$0xff] %v1362_v52  ;;  %v1373_v57 = vpop.f32.mrb[4].mxu0  ;;  %v500_v60 = vadd.f32 1.0, %v484_v50  ;;  %v476_v61 = vand.u32 2147483647, %v428_v45  ;;  %v1375_v62 = vpop.f32.mrb[4].mxu1  ;;  %v708_v1 = vmul.f32 %v692_v51, %v468_v44 }
  0xf6   : > { %1811 = vst [vmem:[#allocation6_spill] sm:$0xff] %v1375_v62  ;;  %v1377_v63 = vpop.f32.mrb[5].mxu0  ;;  %v510_v0 = vadd.f32 1.0, %v494_v46  ;;  %vm436_vm4 = vcmp.ge.f32.partialorder %v420_v39, 0.0  ;;  %v1380_v2 = vmul.f32 0.70710677, %v1356_v40 }
  0xf7   : > { %v1382_v3 = vpop.f32.mrb[5].mxu1  ;;  %v1384_v4 = vpop.f32.mrb[6].mxu0  ;;  %v728_v5 = vmul.f32 1.442695, %v710_v49  ;;  %v492_v6 = vmul.f32 0.3275911, %v476_v61  ;;  %1220 = vrcp.f32 %v500_v60 }
  0xf8   : > { %1812 = vst [vmem:[#allocation7_spill] sm:$0xff] %v1382_v3  ;;  %v700_v7 = vsub.f32 0.0, %v476_v61  ;;  %v1386_v8 = vpop.f32.mrb[6].mxu1  ;;  %v1388_v9 = vmul.f32 0.5, %v357_v34  ;;  %v471_v10 = vand.u32 2147483647, %v1380_v2  ;;  %1222 = vrcp.f32 %v502_v58 }
  0xf9   : > { %1813 = vst [vmem:[#allocation8_spill] sm:$0xff] %v1386_v8  ;;  %v431_v11 = vmul.f32 0.70710677, %v1358_v47  ;;  %v1392_v12 = vpop.f32.mrb[7].mxu0  ;;  %v744_v13 = vmul.f32 1.442695, %v718_v59  ;;  %1224 = vrcp.f32 %v510_v0 }
  0xfa   : > { %v1396_v14 = vsel %vm436_vm4, 1.0, %v1799_v37  ;;  %v716_v15 = vmul.f32 %v700_v7, %v476_v61  ;;  %v1398_v16 = vpop.f32.mrb[7].mxu1  ;;  %v724_v17 = vmul.f32 1.442695, %v708_v1  ;;  %v695_v18 = vsub.f32 0.0, %v471_v10 }
  0xfb   : > { %vm447_vm5 = vcmp.ge.f32.partialorder %v431_v11, 0.0  ;;  %v479_v19 = vand.u32 2147483647, %v431_v11  ;;  %vm444_vm6 = vcmp.ge.f32.partialorder %v428_v45, 0.0  ;;  %v487_v20 = vmul.f32 0.3275911, %v471_v10 }
  0xfc   : > { %v1401_v21 = vsel %vm447_vm5, 1.0, %v1799_v37  ;;  %1226 = vpow2.f32 %v728_v5  ;;  %v508_v22 = vadd.f32 1.0, %v492_v6  ;;  %v711_v23 = vmul.f32 %v695_v18, %v471_v10 }
  0xfd   : > { %1814 = vst [vmem:[#allocation9_spill] sm:$0xff] %v1401_v21  ;;  %v703_v24 = vsub.f32 0.0, %v479_v19  ;;  %1228 = vpow2.f32 %v744_v13  ;;  %v740_v25 = vmul.f32 1.442695, %v716_v15  ;;  %v421_v26 = vmul.f32 0.70710677, %v1360_v48 }
  0xfe   : > { %v429_v27 = vmul.f32 0.70710677, %v1362_v52  ;;  %1230 = vpow2.f32 %v724_v17  ;;  %v1406_v28 = vsel %vm444_vm6, 1.0, %v1799_v37  ;;  %v1409_v29 = vmul.f32 0.5, %v1356_v40 }
  0xff   : > { %v495_v31 = vmul.f32 0.3275911, %v479_v19  ;;  %v503_v32 = vadd.f32 1.0, %v487_v20  ;;  %v469_v33 = vand.u32 2147483647, %v421_v26  ;;  %1232 = vrcp.f32 %v508_v22 }
 0x100   : > { %vm445_vm7 = vcmp.ge.f32.partialorder %v429_v27, 0.0  ;;  %v477_v34 = vand.u32 2147483647, %v429_v27  ;;  %v730_v35 = vmul.f32 1.442695, %v711_v23  ;;  %v719_v36 = vmul.f32 %v703_v24, %v479_v19 }
 0x101   : > { %v1412_v39 = vsel %vm445_vm7, 1.0, %v1799_v37  ;;  %1234 = vpow2.f32 %v740_v25  ;;  %vm439_vm8 = vcmp.ge.f32.partialorder %v1380_v2, 0.0  ;;  %v485_v41 = vmul.f32 0.3275911, %v469_v33  ;;  %v1415_v43 = vpop.eup %1220 }
 0x102   : > { %1815 = vst [vmem:[#allocation10_spill] sm:$0xff] %v1412_v39  ;;  %v693_v42 = vsub.f32 0.0, %v469_v33  ;;  %v511_v40 = vadd.f32 1.0, %v495_v31  ;;  %v493_v44 = vmul.f32 0.3275911, %v477_v34  ;;  %v701_v45 = vsub.f32 0.0, %v477_v34  ;;  %v1418_v49 = vpop.eup %1222 }
 0x103   : > { %v426_v46 = vmul.f32 0.70710677, %v1373_v57  ;;  %v548_v50 = vmul.f32 1.0614054, %v1415_v43  ;;  %1236 = vrcp.f32 %v503_v32  ;;  %v501_v51 = vadd.f32 1.0, %v485_v41  ;;  %v1421_v0 = vpop.eup %1224 }
 0x104   : > { %v709_v58 = vmul.f32 %v693_v42, %v469_v33  ;;  %1238 = vpow2.f32 %v730_v35  ;;  %v746_v59 = vmul.f32 1.442695, %v719_v36  ;;  %v717_v60 = vmul.f32 %v701_v45, %v477_v34 }
 0x105   : > { %v474_v61 = vand.u32 2147483647, %v426_v46  ;;  %v564_v1 = vadd.f32 -1.4531521, %v548_v50  ;;  %v1426_v5 = vsel %vm439_vm8, 1.0, %v1799_v37  ;;  %v1429_v6 = vmul.f32 0.5, %v1360_v48 }
 0x106   : > { %1240 = vrcp.f32 %v501_v51  ;;  %v1431_v7 = vpop.eup %1226  ;;  %vm437_vm9 = vcmp.ge.f32.partialorder %v421_v26, 0.0  ;;  %v509_v10 = vadd.f32 1.0, %v493_v44  ;;  %v726_v17 = vmul.f32 1.442695, %v709_v58 }
 0x107   : > { %1242 = vrcp.f32 %v511_v40  ;;  %v698_v11 = vsub.f32 0.0, %v474_v61  ;;  %v1433_v13 = vpop.eup %1228  ;;  %v580_v15 = vmul.f32 %v1415_v43, %v564_v1  ;;  %vm442_vm10 = vcmp.ge.f32.partialorder %v426_v46, 0.0 }
 0x108   : > { %1816 = vst [vmem:[#allocation11_spill] sm:$0xff] %v1433_v13  ;;  %v434_v2 = vmul.f32 0.70710677, %v1375_v62  ;;  %v1231_v18 = vpop.eup %1230  ;;  %1244 = vpow2.f32 %v746_v59  ;;  %v742_v19 = vmul.f32 1.442695, %v717_v60  ;;  %v1444_v27 = vsel %vm437_vm9, 1.0, %v1799_v37 }
 0x109   : > { %v490_v48 = vmul.f32 0.3275911, %v474_v61  ;;  %v424_v20 = vmul.f32 0.70710677, %v1377_v63  ;;  %v596_v22 = vadd.f32 1.4214138, %v580_v15  ;;  %v714_v23 = vmul.f32 %v698_v11, %v474_v61  ;;  %v1440_v25 = vpop.eup %1232 }
 0x10a   : > { %vm450_vm11 = vcmp.ge.f32.partialorder %v434_v2, 0.0  ;;  %v1438_v24 = vand.u32 2147483647, %v434_v2  ;;  %1246 = vrcp.f32 %v509_v10  ;;  %v1447_v31 = vmul.f32 0.5, %v1373_v57 }
 0x10b   : > { %v1450_v32 = vsel %vm450_vm11, 1.0, %v1799_v37  ;;  %v1452_v33 = vpop.eup %1234  ;;  %v612_v34 = vmul.f32 %v1415_v43, %v596_v22  ;;  %1248 = vpow2.f32 %v726_v17  ;;  %v1457_v35 = vsel %vm442_vm10, 1.0, %v1799_v37 }
 0x10c   : > { %1817 = vst [vmem:[#allocation12_spill] sm:$0xff] %v1450_v32  ;;  %v498_v26 = vmul.f32 0.3275911, %v1438_v24  ;;  %v506_v36 = vadd.f32 1.0, %v490_v48  ;;  %v1461_v41 = vmul.f32 0.5, %v1377_v63  ;;  %1250 = vpow2.f32 %v742_v19 }
 0x10d   : > { %v472_v57 = vand.u32 2147483647, %v424_v20  ;;  %v432_v42 = vmul.f32 0.70710677, %v1382_v3  ;;  %v1464_v40 = vpop.eup %1236  ;;  %v628_v44 = vadd.f32 -0.28449672, %v612_v34 }
 0x10e   : > { %v736_v45 = vmul.f32 1.442695, %v714_v23  ;;  %vm440_vm12 = vcmp.ge.f32.partialorder %v424_v20, 0.0  ;;  %v1466_v50 = vpop.eup %1238  ;;  %v514_v60 = vadd.f32 1.0, %v498_v26  ;;  %v427_v1 = vmul.f32 0.70710677, %v1384_v4 }
 0x10f   : > { %v488_v46 = vmul.f32 0.3275911, %v472_v57  ;;  %v696_v51 = vsub.f32 0.0, %v472_v57  ;;  %vm448_vm13 = vcmp.ge.f32.partialorder %v432_v42, 0.0  ;;  %v480_v58 = vand.u32 2147483647, %v432_v42 }
 0x110   : > { %v1468_v59 = vpop.eup %1240  ;;  %v644_v63 = vmul.f32 %v1415_v43, %v628_v44  ;;  %v1472_v61 = vsel %vm448_vm13, 1.0, %v1799_v37  ;;  %1252 = vrcp.f32 %v506_v36  ;;  %v706_v15 = vsub.f32 0.0, %v1438_v24 }
 0x111   : > { %1818 = vst [vmem:[#allocation13_spill] sm:$0xff] %v1472_v61  ;;  %v1475_v10 = vpop.eup %1242  ;;  %v549_v11 = vmul.f32 1.0614054, %v1468_v59  ;;  %v712_v17 = vmul.f32 %v696_v51, %v472_v57  ;;  %v504_v19 = vadd.f32 1.0, %v488_v46  ;;  %v496_v48 = vmul.f32 0.3275911, %v480_v58 }
 0x112   : > { %v660_v2 = vadd.f32 0.2548296, %v644_v63  ;;  %v704_v22 = vsub.f32 0.0, %v480_v58  ;;  %v1479_v23 = vpop.eup %1244  ;;  %1254 = vpow2.f32 %v736_v45  ;;  %v1483_v26 = vsel %vm440_vm12, 1.0, %v1799_v37 }
 0x113   : > { %1819 = vst [vmem:[#allocation14_spill] sm:$0xff] %v1479_v23  ;;  %v565_v34 = vadd.f32 -1.4531521, %v549_v11  ;;  %v1486_v42 = vmul.f32 0.5, %v1384_v4  ;;  %1256 = vrcp.f32 %v514_v60  ;;  %v475_v57 = vand.u32 2147483647, %v427_v1 }
 0x114   : > { %v676_v36 = vmul.f32 %v1415_v43, %v660_v2  ;;  %v720_v44 = vmul.f32 %v704_v22, %v480_v58  ;;  %v1489_v51 = vpop.eup %1246  ;;  %v732_v63 = vmul.f32 1.442695, %v712_v17  ;;  %vm443_vm14 = vcmp.ge.f32.partialorder %v427_v1, 0.0 }
 0x115   : > { %v581_v46 = vmul.f32 %v1468_v59, %v565_v34  ;;  %v435_v45 = vmul.f32 0.70710677, %v1386_v8  ;;  %v1493_v11 = vpop.eup %1248  ;;  %1258 = vrcp.f32 %v504_v19  ;;  %v512_v37 = vadd.f32 1.0, %v496_v48 }
 0x116   : > { %v756_v20 = vmul.f32 %v1231_v18, %v676_v36  ;;  %v491_v4 = vmul.f32 0.3275911, %v475_v57  ;;  %v699_v32 = vsub.f32 0.0, %v475_v57  ;;  %v1497_v58 = vpop.eup %1250  ;;  %v748_v2 = vmul.f32 1.442695, %v720_v44 }
 0x117   : > { %v597_v62 = vadd.f32 1.4214138, %v581_v46  ;;  %vm451_vm15 = vcmp.ge.f32.partialorder %v435_v45, 0.0  ;;  %v1495_v43 = vand.u32 2147483647, %v435_v45  ;;  %1820 = vst [vmem:[#allocation15_spill] sm:$0xff] %v1497_v58  ;;  %1260 = vpow2.f32 %v732_v63 }
 0x118   : > { %v772_v60 = vsub.f32 1.0, %v756_v20  ;;  %v507_v17 = vadd.f32 1.0, %v491_v4  ;;  %v1821_v22 = vmov -1.0   ;;  %v715_v19 = vmul.f32 %v699_v32, %v475_v57 }
 0x119   : > { %v1500_v34 = vsel %vm451_vm15, 1.0, %v1821_v22  ;;  %v613_v18 = vmul.f32 %v1468_v59, %v597_v62  ;;  %v499_v48 = vmul.f32 0.3275911, %v1495_v43  ;;  %v1506_v46 = vmul.f32 %v706_v15, %v1438_v24 }
 0x11a   : > { %1822 = vst [vmem:[#allocation16_spill] sm:$0xff] %v1500_v34  ;;  %v788_v36 = vmul.f32 %v772_v60, %v1396_v14  ;;  %1262 = vrcp.f32 %v507_v17  ;;  %v425_v45 = vmul.f32 0.70710677, %v1392_v12  ;;  %v1509_v44 = vpop.eup %1252  ;;  %v1513_v4 = vsel %vm443_vm14, 1.0, %v1821_v22 }
 0x11b   : > { %1823 = vst [vmem:[#allocation17_spill] sm:$0xff] %v1506_v46  ;;  %v629_v20 = vadd.f32 -0.28449672, %v613_v18  ;;  %1264 = vrcp.f32 %v512_v37  ;;  %v738_v62 = vmul.f32 1.442695, %v715_v19  ;;  %v515_v63 = vadd.f32 1.0, %v499_v48 }
 0x11c   : > { %v804_v32 = vadd.f32 1.0, %v788_v36  ;;  %1266 = vpow2.f32 %v748_v2  ;;  %v473_v57 = vand.u32 2147483647, %v425_v45  ;;  %v1517_v24 = vpop.eup %1254  ;;  %v1521_v60 = vmul.f32 0.5, %v1392_v12 }
 0x11d   : > { %v645_v15 = vmul.f32 %v1468_v59, %v629_v20  ;;  %vm441_vm1 = vcmp.ge.f32.partialorder %v425_v45, 0.0  ;;  %v1523_v37 = vpop.eup %1256  ;;  %v1527_v2 = vmul.f32 0.5, %v1398_v16  ;;  %1268 = vpow2.f32 %v738_v62 }
 0x11e   : > { %v820_v1 = vmul.f32 %v804_v32, %v1371_v56  ;;  %v489_v17 = vmul.f32 0.3275911, %v473_v57  ;;  %v697_v18 = vsub.f32 0.0, %v473_v57  ;;  %v1535_v12 = vmul.f32 0.70710677, %v1398_v16 }
 0x11f   : > { %v661_v19 = vadd.f32 0.2548296, %v645_v15  ;;  %v551_v48 = vmul.f32 1.0614054, %v1464_v40  ;;  %v1538_v36 = vpop.eup %1258  ;;  %v550_v14 = vmul.f32 1.0614054, %v1418_v49  ;;  %1270 = vrcp.f32 %v515_v63 }
 0x120   : > { %v505_v56 = vadd.f32 1.0, %v489_v17  ;;  %v713_v20 = vmul.f32 %v697_v18, %v473_v57  ;;  %v1284_v32 = vadd.low.f32.bf16 %v820_v1, %v1364_v53  ;;  %v481_v15 = vand.u32 2147483647, %v1535_v12 }
 0x121   : > { %v677_v8 = vmul.f32 %v1468_v59, %v661_v19  ;;  %v567_v34 = vadd.f32 -1.4531521, %v551_v48  ;;  %v1546_v16 = vsel %vm441_vm1, 1.0, %v1821_v22  ;;  %v1553_v1 = vpop.eup %1260  ;;  %v566_v48 = vadd.f32 -1.4531521, %v550_v14 }
 0x122   : > { %1272 = vrcp.f32 %v505_v56  ;;  %v734_v62 = vmul.f32 1.442695, %v713_v20  ;;  %917 = vst.msk [vmem:[%s1532_s29] sm:$0xff] %vm916_vm0, %v1284_v32  ;;  %v1551_v57 = vsel %vm916_vm0, %v1284_v32, 0.0  ;;  %v497_v59 = vmul.f32 0.3275911, %v481_v15 }
 0x123   : > { %v757_v17 = vmul.f32 %v1493_v11, %v677_v8  ;;  %v705_v63 = vsub.f32 0.0, %v481_v15  ;;  %v970_v18 = vmul.f32 %v1284_v32, %v1284_v32  ;;  %v583_v45 = vmul.f32 %v1464_v40, %v567_v34 }
 0x124   : > { %v1556_v19 = vpop.eup %1262  ;;  %1274 = vpow2.f32 %v734_v62  ;;  %v552_v56 = vmul.f32 1.0614054, %v1538_v36  ;;  %v513_v61 = vadd.f32 1.0, %v497_v59  ;;  %v582_v11 = vmul.f32 %v1418_v49, %v566_v48 }
 0x125   : > { %v1560_v20 = vpop.eup %1264  ;;  %v773_v3 = vsub.f32 1.0, %v757_v17  ;;  %v721_v47 = vmul.f32 %v705_v63, %v481_v15  ;;  %v986_v30 = vsel %vm916_vm0, %v970_v18, 0.0  ;;  %v599_v8 = vadd.f32 1.4214138, %v583_v45 }
 0x126   : > { %v1563_v21 = vpop.eup %1266  ;;  %v568_v32 = vadd.f32 -1.4531521, %v552_v56  ;;  %v554_v62 = vmul.f32 1.0614054, %v1509_v44  ;;  %1276 = vrcp.f32 %v513_v61  ;;  %v555_v38 = vmul.f32 1.0614054, %v1556_v19 }
 0x127   : > { %1824 = vst [vmem:[#allocation18_spill] sm:$0xff] %v1563_v21  ;;  %v789_v34 = vmul.f32 %v773_v3, %v1444_v27  ;;  %v750_v14 = vmul.f32 1.442695, %v721_v47  ;;  %v615_v17 = vmul.f32 %v1464_v40, %v599_v8  ;;  %v598_v59 = vadd.f32 1.4214138, %v582_v11  ;;  %v1571_v18 = vpop.eup %1268 }
 0x128   : > { %v584_v15 = vmul.f32 %v1538_v36, %v568_v32  ;;  %v570_v63 = vadd.f32 -1.4531521, %v554_v62  ;;  %v571_v48 = vadd.f32 -1.4531521, %v555_v38  ;;  %v556_v56 = vmul.f32 1.0614054, %v1440_v25 }
 0x129   : > { %v805_v45 = vadd.f32 1.0, %v789_v34  ;;  %1278 = vpow2.f32 %v750_v14  ;;  %v631_v21 = vadd.f32 -0.28449672, %v615_v17  ;;  %v614_v3 = vmul.f32 %v1418_v49, %v598_v59  ;;  %v1576_v61 = vpop.eup %1270 }
 0x12a   : > { %v600_v27 = vadd.f32 1.4214138, %v584_v15  ;;  %v586_v47 = vmul.f32 %v1509_v44, %v570_v63  ;;  %v587_v11 = vmul.f32 %v1556_v19, %v571_v48  ;;  %v572_v32 = vadd.f32 -1.4531521, %v556_v56 }
 0x12b   : > { %v821_v8 = vmul.f32 %v805_v45, %v1429_v6  ;;  %v1581_v62 = vmul.f32 1.0614054, %v1489_v51  ;;  %v647_v34 = vmul.f32 %v1464_v40, %v631_v21  ;;  %v630_v14 = vadd.f32 -0.28449672, %v614_v3 }
 0x12c   : > { %v1583_v38 = vpop.eup %1272  ;;  %v616_v17 = vmul.f32 %v1538_v36, %v600_v27  ;;  %v602_v59 = vadd.f32 1.4214138, %v586_v47  ;;  %v603_v6 = vadd.f32 1.4214138, %v587_v11  ;;  %v588_v45 = vmul.f32 %v1440_v25, %v572_v32 }
 0x12d   : > { %v553_v15 = vmul.f32 1.0614054, %v1583_v38  ;;  %v1285_v63 = vadd.high.f32.bf16 %v821_v8, %v1364_v53  ;;  %v663_v56 = vadd.f32 0.2548296, %v647_v34  ;;  %v646_v52 = vmul.f32 %v1418_v49, %v630_v14  ;;  %v1599_v8 = vpop.permute.xlu0 %856 }
 0x12e   : > { %v1590_v48 = vpop.eup %1274  ;;  %v632_v39 = vadd.f32 -0.28449672, %v616_v17  ;;  %v618_v23 = vmul.f32 %v1509_v44, %v602_v59  ;;  %v619_v47 = vmul.f32 %v1556_v19, %v603_v6  ;;  %vm449_vm2 = vcmp.ge.f32.partialorder %v1535_v12, 0.0 }
 0x12f   : > { %v569_v21 = vadd.f32 -1.4531521, %v553_v15  ;;  %918 = vst.msk [vmem:[%s1532_s29 + $0x8] sm:$0xff] %vm916_vm0, %v1285_v63  ;;  %v934_v3 = vsel %vm916_vm0, %v1285_v63, 0.0  ;;  %v971_v27 = vmul.f32 %v1285_v63, %v1285_v63  ;;  %v679_v53 = vmul.f32 %v1464_v40, %v663_v56 }
 0x130   : > { %v662_v11 = vadd.f32 0.2548296, %v646_v52  ;;  %v1602_v32 = vadd.f32 %v934_v3, %v1551_v57  ;;  %v648_v34 = vmul.f32 %v1538_v36, %v632_v39  ;;  %v1605_v14 = vpop.eup %1276  ;;  %v634_v15 = vadd.f32 -0.28449672, %v618_v23 }
 0x131   : > { %v585_v17 = vmul.f32 %v1583_v38, %v569_v21  ;;  %v987_v59 = vsel %vm916_vm0, %v971_v27, 0.0  ;;  %v635_v63 = vadd.f32 -0.28449672, %v619_v47  ;;  %v561_v6 = vmul.f32 1.0614054, %v1605_v14 }
 0x132   : > { %v759_v40 = vmul.f32 %v1466_v50, %v679_v53  ;;  %v678_v56 = vmul.f32 %v1418_v49, %v662_v11  ;;  %v1612_v52 = vadd.f32 %v987_v59, %v986_v30  ;;  %v664_v39 = vadd.f32 0.2548296, %v648_v34 }
 0x133   : > { %v1614_v57 = vpop.eup %1278  ;;  %v601_v3 = vadd.f32 1.4214138, %v585_v17  ;;  %v650_v13 = vmul.f32 %v1509_v44, %v634_v15  ;;  %v651_v21 = vmul.f32 %v1556_v19, %v635_v63  ;;  %v577_v58 = vadd.f32 -1.4531521, %v561_v6  ;;  %v1623_v17 = vpop.permute.xlu0 %862 }
 0x134   : > { %v775_v27 = vsub.f32 1.0, %v759_v40  ;;  %v758_v23 = vmul.f32 %v1431_v7, %v678_v56  ;;  %v604_v47 = vadd.f32 1.4214138, %v588_v45  ;;  %v680_v50 = vmul.f32 %v1538_v36, %v664_v39  ;;  %v859_v63 = vpop.permute.xlu1 %858 }
 0x135   : > { %v617_v46 = vmul.f32 %v1583_v38, %v601_v3  ;;  %v666_v49 = vadd.f32 0.2548296, %v650_v13  ;;  %v667_v30 = vadd.f32 0.2548296, %v651_v21  ;;  %v593_v53 = vmul.f32 %v1605_v14, %v577_v58 }
 0x136   : > { %v791_v11 = vmul.f32 %v775_v27, %v1426_v5  ;;  %v774_v34 = vsub.f32 1.0, %v758_v23  ;;  %v620_v59 = vmul.f32 %v1440_v25, %v604_v47  ;;  %v760_v7 = vmul.f32 %v1553_v1, %v680_v50 }
 0x137   : > { %v633_v15 = vadd.f32 -0.28449672, %v617_v46  ;;  %v682_v45 = vmul.f32 %v1509_v44, %v666_v49  ;;  %v683_v6 = vmul.f32 %v1556_v19, %v667_v30  ;;  %v609_v36 = vadd.f32 1.4214138, %v593_v53 }
 0x138   : > { %v807_v13 = vadd.f32 1.0, %v791_v11  ;;  %v790_v40 = vmul.f32 %v774_v34, %v1369_v55  ;;  %v636_v58 = vadd.f32 -0.28449672, %v620_v59  ;;  %v776_v56 = vsub.f32 1.0, %v760_v7 }
 0x139   : > { %v649_v5 = vmul.f32 %v1583_v38, %v633_v15  ;;  %v762_v3 = vmul.f32 %v1517_v24, %v682_v45  ;;  %v763_v39 = vmul.f32 %v1571_v18, %v683_v6  ;;  %v625_v46 = vmul.f32 %v1605_v14, %v609_v36  ;;  %v867_v18 = vpop.permute.xlu0 %866 }
 0x13a   : > { %v823_v1 = vmul.f32 %v807_v13, %v1409_v29  ;;  %v806_v21 = vadd.f32 1.0, %v790_v40  ;;  %v652_v44 = vmul.f32 %v1440_v25, %v636_v58  ;;  %v792_v55 = vmul.f32 %v776_v56, %v1483_v26  ;;  %v861_v29 = vpop.permute.xlu1 %860 }
 0x13b   : > { %v665_v19 = vadd.f32 0.2548296, %v649_v5  ;;  %v778_v27 = vsub.f32 1.0, %v762_v3  ;;  %v779_v23 = vsub.f32 1.0, %v763_v39  ;;  %v641_v47 = vadd.f32 -0.28449672, %v625_v46 }
 0x13c   : > { %v903_v50 = vadd.f32 %v859_v63, %v823_v1  ;;  %v822_v24 = vmul.f32 %v806_v21, %v1366_v54  ;;  %v668_v49 = vadd.f32 0.2548296, %v652_v44  ;;  %v808_v53 = vadd.f32 1.0, %v792_v55 }
 0x13d   : > { %v681_v30 = vmul.f32 %v1583_v38, %v665_v19  ;;  %v794_v11 = vmul.f32 %v778_v27, %v1457_v35  ;;  %v795_v34 = vmul.f32 %v779_v23, %v1513_v4  ;;  %v657_v59 = vmul.f32 %v1605_v14, %v641_v47  ;;  %v1659_v3 = vpop.permute.xlu0 %870 }
 0x13e   : > { %920 = vst.msk [vmem:[%s1532_s29 + $0x18] sm:$0xff] %vm916_vm0, %v903_v50  ;;  %v938_v26 = vsel %vm916_vm0, %v903_v50, 0.0  ;;  %v973_v15 = vmul.f32 %v903_v50, %v903_v50  ;;  %v902_v54 = vadd.f32 %v1599_v8, %v822_v24  ;;  %v824_v38 = vmul.f32 %v808_v53, %v1461_v41 }
 0x13f   : > { %v761_v63 = vmul.f32 %v1590_v48, %v681_v30  ;;  %v810_v7 = vadd.f32 1.0, %v794_v11  ;;  %v811_v45 = vadd.f32 1.0, %v795_v34  ;;  %v673_v6 = vadd.f32 0.2548296, %v657_v59 }
 0x140   : > { %v991_v35 = vsel %vm916_vm0, %v973_v15, 0.0  ;;  %919 = vst.msk [vmem:[%s1532_s29 + $0x10] sm:$0xff] %vm916_vm0, %v902_v54  ;;  %v936_v4 = vsel %vm916_vm0, %v902_v54, 0.0  ;;  %v972_v36 = vmul.f32 %v902_v54, %v902_v54  ;;  %v904_v58 = vadd.f32 %v861_v29, %v824_v38 }
 0x141   : > { %v777_v13 = vsub.f32 1.0, %v761_v63  ;;  %v937_v40 = vadd.f32 %v936_v4, %v1602_v32  ;;  %v826_v8 = vmul.f32 %v810_v7, %v1447_v31  ;;  %v689_v48 = vmul.f32 %v1605_v14, %v673_v6  ;;  %v865_v14 = vpop.permute.xlu1 %864  ;;  %v1680_v30 = vpop.permute.xlu0 %874 }
 0x142   : > { %v989_v41 = vsel %vm916_vm0, %v972_v36, 0.0  ;;  %v827_v5 = vmul.f32 %v811_v45, %v1486_v42  ;;  %v684_v56 = vmul.f32 %v1440_v25, %v668_v49  ;;  %921 = vst.msk [vmem:[%s1532_s29 + $0x20] sm:$0xff] %vm916_vm0, %v904_v58  ;;  %v940_v31 = vsel %vm916_vm0, %v904_v58, 0.0 }
 0x143   : > { %v793_v39 = vmul.f32 %v777_v13, %v1546_v16  ;;  %v990_v46 = vadd.f32 %v989_v41, %v1612_v52  ;;  %v939_v32 = vadd.f32 %v938_v26, %v937_v40  ;;  %v769_v1 = vmul.f32 %v1614_v57, %v689_v48 }
 0x144   : > { %v974_v21 = vmul.f32 %v904_v58, %v904_v58  ;;  %v906_v42 = vadd.f32 %v865_v14, %v826_v8  ;;  %v907_v44 = vadd.f32 %v867_v18, %v827_v5  ;;  %v764_v16 = vmul.f32 %v1452_v33, %v684_v56 }
 0x145   : > { %v941_v25 = vadd.f32 %v940_v31, %v939_v32  ;;  %v992_v19 = vadd.f32 %v991_v35, %v990_v46  ;;  %v809_v55 = vadd.f32 1.0, %v793_v39  ;;  %v465_v52 = vsel %vm449_vm2, 1.0, %v1821_v22  ;;  %v879_v48 = vpop.permute.xlu0 %878  ;;  %v869_v41 = vpop.permute.xlu1 %868 }
 0x146   : > { %v785_v27 = vsub.f32 1.0, %v769_v1  ;;  %v993_v23 = vsel %vm916_vm0, %v974_v21, 0.0  ;;  %923 = vst.msk [vmem:[%s1532_s29 + $0x30] sm:$0xff] %vm916_vm0, %v906_v42  ;;  %v976_v47 = vmul.f32 %v906_v42, %v906_v42  ;;  %924 = vst.msk [vmem:[%s1532_s29 + $0x38] sm:$0xff] %vm916_vm0, %v907_v44  ;;  %v944_v24 = vsel %vm916_vm0, %v906_v42, 0.0 }
 0x147   : > { %v994_v57 = vadd.f32 %v993_v23, %v992_v19  ;;  %v825_v50 = vmul.f32 %v809_v55, %v1521_v60  ;;  %v946_v33 = vsel %vm916_vm0, %v907_v44, 0.0  ;;  %v977_v49 = vmul.f32 %v907_v44, %v907_v44 }
 0x148   : > { %v801_v18 = vmul.f32 %v785_v27, %v465_v52  ;;  %v780_v12 = vsub.f32 1.0, %v764_v16  ;;  %v573_v22 = vadd.f32 -1.4531521, %v1581_v62  ;;  %v997_v53 = vsel %vm916_vm0, %v976_v47, 0.0 }
 0x149   : > { %v905_v29 = vadd.f32 %v1623_v17, %v825_v50  ;;  %v558_v11 = vmul.f32 1.0614054, %v1421_v0  ;;  %v559_v60 = vmul.f32 1.0614054, %v1475_v10  ;;  %v560_v26 = vmul.f32 1.0614054, %v1560_v20 }
 0x14a   : > { %v796_v34 = vmul.f32 %v780_v12, %v1406_v28  ;;  %v589_v59 = vmul.f32 %v1489_v51, %v573_v22  ;;  %v817_v15 = vadd.f32 1.0, %v801_v18  ;;  %v999_v1 = vsel %vm916_vm0, %v977_v49, 0.0 }
 0x14b   : > { %922 = vst.msk [vmem:[%s1532_s29 + $0x28] sm:$0xff] %vm916_vm0, %v905_v29  ;;  %v942_v62 = vsel %vm916_vm0, %v905_v29, 0.0  ;;  %v975_v54 = vmul.f32 %v905_v29, %v905_v29  ;;  %v574_v63 = vadd.f32 -1.4531521, %v558_v11  ;;  %v575_v17 = vadd.f32 -1.4531521, %v559_v60 }
 0x14c   : > { %v943_v38 = vadd.f32 %v942_v62, %v941_v25  ;;  %v812_v7 = vadd.f32 1.0, %v796_v34  ;;  %v605_v45 = vadd.f32 1.4214138, %v589_v59  ;;  %v576_v6 = vadd.f32 -1.4531521, %v560_v26  ;;  %v1826_v60 = vld [vmem:[#allocation17_spill] sm:$0xff] }
 0x14d   : > { %v995_v35 = vsel %vm916_vm0, %v975_v54, 0.0  ;;  %v590_v28 = vmul.f32 %v1421_v0, %v574_v63  ;;  %v591_v4 = vmul.f32 %v1475_v10, %v575_v17  ;;  %v833_v36 = vmul.f32 %v817_v15, %v1527_v2  ;;  %v1827_v62 = vld [vmem:[#allocation15_spill] sm:$0xff] }
 0x14e   : > { %v996_v13 = vadd.f32 %v995_v35, %v994_v57  ;;  %v945_v40 = vadd.f32 %v944_v24, %v943_v38  ;;  %v828_v58 = vmul.f32 %v812_v7, %v1388_v9  ;;  %v621_v8 = vmul.f32 %v1489_v51, %v605_v45 }
 0x14f   : > { %v606_v5 = vadd.f32 1.4214138, %v590_v28  ;;  %v607_v56 = vadd.f32 1.4214138, %v591_v4  ;;  %v592_v39 = vmul.f32 %v1560_v20, %v576_v6  ;;  %v1699_v46 = vadd.f32 %v879_v48, %v833_v36  ;;  %v1828_v28 = vld [vmem:[#allocation11_spill] sm:$0xff]  ;;  %v1829_v36 = vld [vmem:[#allocation14_spill] sm:$0xff] }
 0x150   : > { %v998_v32 = vadd.f32 %v997_v53, %v996_v13  ;;  %v947_v31 = vadd.f32 %v946_v33, %v945_v40  ;;  %v908_v14 = vadd.f32 %v869_v41, %v828_v58  ;;  %v637_v2 = vadd.f32 -0.28449672, %v621_v8  ;;  %v1830_v58 = vld [vmem:[#allocation10_spill] sm:$0xff]  ;;  %v1831_v41 = vld [vmem:[#allocation5_spill] sm:$0xff] }
 0x151   : > { %v622_v9 = vmul.f32 %v1421_v0, %v606_v5  ;;  %v623_v21 = vmul.f32 %v1475_v10, %v607_v56  ;;  %v608_v42 = vadd.f32 1.4214138, %v592_v39  ;;  %930 = vst.msk [vmem:[%s1532_s29 + $0x68] sm:$0xff] %vm916_vm0, %v1699_v46  ;;  %v562_v50 = vmul.f32 1.0614054, %v1523_v37  ;;  %v1832_v39 = vld [vmem:[#allocation18_spill] sm:$0xff] }
 0x152   : > { %v1000_v44 = vadd.f32 %v999_v1, %v998_v32  ;;  %925 = vst.msk [vmem:[%s1532_s29 + $0x40] sm:$0xff] %vm916_vm0, %v908_v14  ;;  %v948_v25 = vsel %vm916_vm0, %v908_v14, 0.0  ;;  %v978_v19 = vmul.f32 %v908_v14, %v908_v14  ;;  %v653_v55 = vmul.f32 %v1489_v51, %v637_v2  ;;  %v1833_v1 = vld [vmem:[#allocation3_spill] sm:$0xff] }
 0x153   : > { %v1711_v16 = vadd.f32 %v948_v25, %v947_v31  ;;  %v638_v52 = vadd.f32 -0.28449672, %v622_v9  ;;  %v639_v27 = vadd.f32 -0.28449672, %v623_v21  ;;  %v624_v23 = vmul.f32 %v1560_v20, %v608_v42  ;;  %v1834_v21 = vld [vmem:[#allocation9_spill] sm:$0xff] }
 0x154   : > { %v1001_v47 = vsel %vm916_vm0, %v978_v19, 0.0  ;;  %v669_v57 = vadd.f32 0.2548296, %v653_v55  ;;  %v1825_v12 = vsub.f32 0.0, %v1495_v43  ;;  %v578_v53 = vadd.f32 -1.4531521, %v562_v50 }
 0x155   : > { %v1716_v24 = vadd.f32 %v1001_v47, %v1000_v44  ;;  %v654_v33 = vmul.f32 %v1421_v0, %v638_v52  ;;  %v655_v18 = vmul.f32 %v1475_v10, %v639_v27  ;;  %v640_v49 = vadd.f32 -0.28449672, %v624_v23  ;;  %v1835_v44 = vld [vmem:[#allocation2_spill] sm:$0xff]  ;;  %v1836_v27 = vld [vmem:[#allocation4_spill] sm:$0xff] }
 0x156   : > { %v723_v22 = vmul.f32 %v1825_v12, %v1495_v43  ;;  %v685_v29 = vmul.f32 %v1489_v51, %v669_v57  ;;  %v563_v11 = vmul.f32 1.0614054, %v1576_v61  ;;  %v752_v34 = vmul.f32 1.442695, %v1826_v60  ;;  %v873_v57 = vpop.permute.xlu1 %872 }
 0x157   : > { %v670_v59 = vadd.f32 0.2548296, %v654_v33  ;;  %v671_v26 = vadd.f32 0.2548296, %v655_v18  ;;  %v656_v15 = vmul.f32 %v1560_v20, %v640_v49  ;;  %v594_v63 = vmul.f32 %v1523_v37, %v578_v53  ;;  %v1837_v33 = vld [vmem:[#allocation13_spill] sm:$0xff] }
 0x158   : > { %v765_v54 = vmul.f32 %v1827_v62, %v685_v29  ;;  %v579_v17 = vadd.f32 -1.4531521, %v563_v11  ;;  %v754_v51 = vmul.f32 1.442695, %v723_v22  ;;  %1280 = vpow2.f32 %v752_v34  ;;  %v1838_v29 = vld [vmem:[#allocation7_spill] sm:$0xff] }
 0x159   : > { %v686_v38 = vmul.f32 %v1421_v0, %v670_v59  ;;  %v687_v43 = vmul.f32 %v1475_v10, %v671_v26  ;;  %v672_v7 = vadd.f32 0.2548296, %v656_v15  ;;  %v610_v6 = vadd.f32 1.4214138, %v594_v63 }
 0x15a   : > { %v781_v45 = vsub.f32 1.0, %v765_v54  ;;  %v595_v35 = vmul.f32 %v1576_v61, %v579_v17  ;;  %v413_v10 = vmul.f32 0.5, %v1831_v41  ;;  %1282 = vpow2.f32 %v754_v51 }
 0x15b   : > { %v766_v4 = vmul.f32 %v1828_v28, %v686_v38  ;;  %v767_v13 = vmul.f32 %v1829_v36, %v687_v43  ;;  %v688_v40 = vmul.f32 %v1560_v20, %v672_v7  ;;  %v626_v48 = vmul.f32 %v1523_v37, %v610_v6 }
 0x15c   : > { %v797_v8 = vmul.f32 %v781_v45, %v1830_v58  ;;  %v611_v0 = vadd.f32 1.4214138, %v595_v35  ;;  %v414_v25 = vmul.f32 0.5, %v1835_v44  ;;  %v415_v23 = vmul.f32 0.5, %v1836_v27 }
 0x15d   : > { %v782_v5 = vsub.f32 1.0, %v766_v4  ;;  %v783_v56 = vsub.f32 1.0, %v767_v13  ;;  %v768_v32 = vmul.f32 %v1832_v39, %v688_v40  ;;  %v642_v14 = vadd.f32 -0.28449672, %v626_v48  ;;  %v1840_v39 = vld [vmem:[#allocation6_spill] sm:$0xff] }
 0x15e   : > { %v813_v31 = vadd.f32 1.0, %v797_v8  ;;  %v627_v2 = vmul.f32 %v1576_v61, %v611_v0  ;;  %v416_v53 = vmul.f32 0.5, %v1838_v29  ;;  %v983_v48 = vmul.f32 %v1699_v46, %v1699_v46 }
 0x15f   : > { %v798_v9 = vmul.f32 %v782_v5, %v1833_v1  ;;  %v799_v20 = vmul.f32 %v783_v56, %v1834_v21  ;;  %v784_v42 = vsub.f32 1.0, %v768_v32  ;;  %v658_v55 = vmul.f32 %v1523_v37, %v642_v14  ;;  %v1841_v21 = vld [vmem:[#allocation16_spill] sm:$0xff] }
 0x160   : > { %v829_v19 = vmul.f32 %v813_v31, %v413_v10  ;;  %v643_v52 = vadd.f32 -0.28449672, %v627_v2  ;;  %v1839_v10 = vld [vmem:[#allocation12_spill] sm:$0xff]  ;;  %v418_v32 = vmul.f32 0.5, %v1840_v39  ;;  %v958_v1 = vsel %vm916_vm0, %v1699_v46, 0.0 }
 0x161   : > { %v814_v47 = vadd.f32 1.0, %v798_v9  ;;  %v815_v50 = vadd.f32 1.0, %v799_v20  ;;  %v800_v18 = vmul.f32 %v784_v42, %v1837_v33  ;;  %v674_v12 = vadd.f32 0.2548296, %v658_v55 }
 0x162   : > { %v909_v49 = vadd.f32 %v1659_v3, %v829_v19  ;;  %v659_v22 = vmul.f32 %v1576_v61, %v643_v52  ;;  %v1281_v54 = vpop.eup %1280  ;;  %v1842_v19 = vld [vmem:[#allocation8_spill] sm:$0xff]  ;;  %v1011_v52 = vsel %vm916_vm0, %v983_v48, 0.0  ;;  %vm1023_vm3 = vcmask 1040384  }
 0x163   : > { %v830_v11 = vmul.f32 %v814_v47, %v414_v25  ;;  %v831_v60 = vmul.f32 %v815_v50, %v415_v23  ;;  %v816_v34 = vadd.f32 1.0, %v800_v18  ;;  %v690_v15 = vmul.f32 %v1523_v37, %v674_v12 }
 0x164   : > { %926 = vst.msk [vmem:[%s1532_s29 + $0x48] sm:$0xff] %vm916_vm0, %v909_v49  ;;  %v950_v59 = vsel %vm916_vm0, %v909_v49, 0.0  ;;  %v979_v26 = vmul.f32 %v909_v49, %v909_v49  ;;  %v675_v62 = vadd.f32 0.2548296, %v659_v22  ;;  %v1283_v35 = vpop.eup %1282  ;;  %v419_v55 = vmul.f32 0.5, %v1842_v19 }
 0x165   : > { %v951_v3 = vadd.f32 %v950_v59, %v1711_v16  ;;  %v910_v63 = vadd.f32 %v873_v57, %v830_v11  ;;  %v911_v17 = vadd.f32 %v1680_v30, %v831_v60  ;;  %v832_v38 = vmul.f32 %v816_v34, %v416_v53  ;;  %v877_v16 = vpop.permute.xlu1 %876  ;;  %v883_v57 = vpop.permute.xlu0 %882 }
 0x166   : > { %v1003_v43 = vsel %vm916_vm0, %v979_v26, 0.0  ;;  %v770_v7 = vmul.f32 %v1281_v54, %v690_v15  ;;  %v691_v51 = vmul.f32 %v1576_v61, %v675_v62  ;;  %vm1025_vm4 = vcmask 25600  }
 0x167   : > { %v1004_v45 = vadd.f32 %v1003_v43, %v1716_v24  ;;  %927 = vst.msk [vmem:[%s1532_s29 + $0x50] sm:$0xff] %vm916_vm0, %v910_v63  ;;  %v952_v37 = vsel %vm916_vm0, %v910_v63, 0.0  ;;  %v980_v6 = vmul.f32 %v910_v63, %v910_v63  ;;  %928 = vst.msk [vmem:[%s1532_s29 + $0x58] sm:$0xff] %vm916_vm0, %v911_v17  ;;  %v981_v30 = vmul.f32 %v911_v17, %v911_v17 }
 0x168   : > { %v953_v28 = vadd.f32 %v952_v37, %v951_v3  ;;  %v912_v4 = vadd.f32 %v877_v16, %v832_v38  ;;  %v786_v36 = vsub.f32 1.0, %v770_v7  ;;  %v954_v61 = vsel %vm916_vm0, %v911_v17, 0.0 }
 0x169   : > { %v1005_v13 = vsel %vm916_vm0, %v980_v6, 0.0  ;;  %v771_v40 = vmul.f32 %v1283_v35, %v691_v51  ;;  %v1007_v8 = vsel %vm916_vm0, %v981_v30, 0.0  ;;  %v881_v25 = vpop.permute.xlu1 %880 }
 0x16a   : > { %v1006_v24 = vadd.f32 %v1005_v13, %v1004_v45  ;;  %v955_v58 = vadd.f32 %v954_v61, %v953_v28  ;;  %929 = vst.msk [vmem:[%s1532_s29 + $0x60] sm:$0xff] %vm916_vm0, %v912_v4  ;;  %v956_v0 = vsel %vm916_vm0, %v912_v4, 0.0  ;;  %v982_v41 = vmul.f32 %v912_v4, %v912_v4 }
 0x16b   : > { %v802_v5 = vmul.f32 %v786_v36, %v1839_v10  ;;  %v787_v56 = vsub.f32 1.0, %v771_v40 }
 0x16c   : > { %v1008_v31 = vadd.f32 %v1007_v8, %v1006_v24  ;;  %v957_v14 = vadd.f32 %v956_v0, %v955_v58  ;;  %v1009_v2 = vsel %vm916_vm0, %v982_v41, 0.0 }
 0x16d   : > { %v818_v9 = vadd.f32 1.0, %v802_v5  ;;  %v803_v20 = vmul.f32 %v787_v56, %v1841_v21 }
 0x16e   : > { %v1010_v42 = vadd.f32 %v1009_v2, %v1008_v31  ;;  %v959_v44 = vadd.f32 %v958_v1, %v957_v14 }
 0x16f   : > { %v834_v27 = vmul.f32 %v818_v9, %v418_v32  ;;  %v819_v23 = vadd.f32 1.0, %v803_v20 }
 0x170   : > { %v1012_v47 = vadd.f32 %v1011_v52, %v1010_v42 }
 0x171   : > { %v914_v50 = vadd.f32 %v881_v25, %v834_v27  ;;  %v835_v33 = vmul.f32 %v819_v23, %v419_v55 }
 0x173   : > { %931 = vst.msk [vmem:[%s1532_s29 + $0x70] sm:$0xff] %vm916_vm0, %v914_v50  ;;  %v960_v46 = vsel %vm916_vm0, %v914_v50, 0.0  ;;  %v984_v18 = vmul.f32 %v914_v50, %v914_v50  ;;  %v915_v49 = vadd.f32 %v883_v57, %v835_v33 }
 0x174   : > { %v961_v12 = vadd.f32 %v960_v46, %v959_v44 }
 0x175   : > { %v1013_v22 = vsel %vm916_vm0, %v984_v18, 0.0  ;;  %932 = vst.msk [vmem:[%s1532_s29 + $0x78] sm:$0xff] %vm916_vm0, %v915_v49  ;;  %v962_v29 = vsel %vm916_vm0, %v915_v49, 0.0  ;;  %v985_v53 = vmul.f32 %v915_v49, %v915_v49 }
 0x176   : > { %v1014_v11 = vadd.f32 %v1013_v22, %v1012_v47  ;;  %v963_v60 = vadd.f32 %v962_v29, %v961_v12 }
 0x177   : > { %v1015_v34 = vsel %vm916_vm0, %v985_v53, 0.0 }
 0x178   : > { %v964_v59 = vrot.slane %v963_v60, 4  ;;  %v1016_v26 = vadd.f32 %v1015_v34, %v1014_v11 }
 0x17a   : > { %v965_v15 = vadd.f32 %v964_v59, %v963_v60  ;;  %v1017_v62 = vrot.slane %v1016_v26, 4 }
 0x17c   : > { %v966_v54 = vrot.slane %v965_v15, 2  ;;  %v1018_v3 = vadd.f32 %v1017_v62, %v1016_v26 }
 0x17e   : > { %v967_v63 = vadd.f32 %v966_v54, %v965_v15  ;;  %v1019_v17 = vrot.slane %v1018_v3, 2 }
 0x180   : > { %v968_v38 = vrot.slane %v967_v63, 1  ;;  %v1020_v43 = vadd.f32 %v1019_v17, %v1018_v3 }
 0x182   : > { %v1021_v7 = vrot.slane %v1020_v43, 1  ;;  %v969_v51 = vadd.f32 %v968_v38, %v967_v63 }
 0x184   : > { %v1022_v45 = vadd.f32 %v1021_v7, %v1020_v43 }
 0x186   : > { %v1024_v37 = vsel %vm1023_vm3, %v969_v51, %v1022_v45 }
 0x187   : > { %1026 = vst.msk [vmem:[%s184_s6] sm:$0x3] %vm1025_vm4, %v1024_v37 }
 0x188 PF: > { %s14_s12 = sadd.s32 1, %s1292_s12  }
 0x189   : > { %p11_p5 = scmp.ge.s32.totalorder %s14_s12, 6  }
 0x18b   :  { %13 = sbr.rel (!%p11_p5) target bundleno = 1 (0x1), region = 70 }

// kernel: irmlp_forward.4
= control target key start
LH: loop header
LB: loop body
LE: loop exit
PB: predicated region body
PF: predicated region fallthrough
CT: control target
= control target key end

     0   :  { %s1538_s18 = smov 0   ;;  %s2156_s0 = inlined_call_operand.vmem [shape: f32[512,4], index: 0, kind: input, shape index: {}]   ;;  %s2157_s1 = inlined_call_operand.vmem [shape: f32[4,16], index: 1, kind: input, shape index: {}]   ;;  %s2158_s2 = inlined_call_operand.vmem [shape: f32[1,16], index: 2, kind: input, shape index: {}]   ;;  %s2159_s3 = inlined_call_operand.vmem [shape: f32[16,8], index: 3, kind: input, shape index: {}]   ;;  %s2160_s4 = inlined_call_operand.vmem [shape: f32[512,8], index: 4, kind: output, shape index: {0}]   ;;  %s2161_s5 = inlined_call_operand.vmem [shape: f32[4,2,8], index: 5, kind: output, shape index: {1}]  }
   0x1 LB: > { %s1544_s19 = sadd.s32 4294967295, %s1505_s18   ;;  %p1291_p0 = scmp.ge.s32.totalorder %s1505_s18, 1  ;;  %s1505_s18 = sphi %s1538_s18, %s16_s18  }
   0x2   : > { %p191_p1 = scmp.lt.s32.totalorder %s1505_s18, 5 }
   0x4   : > { %p192_p2 = pnand %p1291_p0, %p191_p1 }
   0x6   : > { %195 = sbr.rel (%p192_p2) target bundleno = 590 (0x24e), region = 36 }
   0xd   : > { %v255_v0 = vld [vmem:[%s2157_s1] sm:$0xf]  ;;  %vm312_vm0 = vcmask 1043456   ;;  %s1292_s22 = sshll.u32 %s1544_s19, 4  ;;  %vm263_vm1 = vcmask 31744   ;;  %v894_v18 = vld [vmem:[%s2159_s3 + $0x8] sm:$0xff] }
   0xe   : > { %1368 = vmatprep.subr.msk.mxu0 %vm312_vm0, %v255_v0  ;;  %p224_p3 = scmp.lt.s32.totalorder %s1292_s22, 63  ;;  %v893_v17 = vld [vmem:[%s2159_s3] sm:$0xff]  ;;  %vm895_vm11 = vcmask 130048   ;;  %p235_p4 = scmp.lt.s32.totalorder %s1544_s19, 3 }
   0xf   : > { %1369 = vmatpush3.msk.msra.mxu0 %vm312_vm0, %v255_v0  ;;  %v1422_v19 = vpack.c.bf16 %v894_v18, %v893_v17  ;;  %v1603_v20 = vld [vmem:[%s2158_s2] ss:$0 sm:$0xff] }
  0x10   : > { %s2194_s22 = smov (!%p224_p3, %s1292_s22), 63  ;;  %s2196_s19 = smov (!%p235_p4, %s1544_s19), 3 }
  0x11   : > { %s1293_s23 = sshll.u32 %s2194_s22, 3  ;;  %1423 = vmatprep.subr.bf16.mxu1 %v1422_v19  ;;  %s1296_s11 = sshll.u32 %s2196_s19, 1 }
  0x12   : > { %s1560_s26 = scalar_lea.vmem %s2156_s0, %s1293_s23  ;;  %1425 = vmatpush3.bf16.msra.mxu1 %v1422_v19  ;;  %s2082_s10 = scalar_lea.vmem %s2160_s4, %s1293_s23 }
  0x13   : > { %v239_v1 = vld [vmem:[%s1560_s26] sm:$0xff]  ;;  %v240_v2 = vld [vmem:[%s1560_s26 + $0x8] sm:$0xff]  ;;  %v241_v3 = vld [vmem:[%s1560_s26 + $0x10] sm:$0xff]  ;;  %s238_s14 = scalar_lea.vmem %s2161_s5, %s1296_s11 }
  0x14   : > { %1370 = vmatprep.mubr.msk.f32.mxu0 %vm263_vm1, %v239_v1  ;;  %v242_v4 = vld [vmem:[%s1560_s26 + $0x18] sm:$0xff]  ;;  %v243_v5 = vld [vmem:[%s1560_s26 + $0x20] sm:$0xff]  ;;  %v244_v6 = vld [vmem:[%s1560_s26 + $0x28] sm:$0xff] }
  0x15   : > { %1371 = vmatmul.mubr.msk.f32.vlgmr.msra.gmra.mrb[0].mxu0 %vm263_vm1, %v240_v2  ;;  %v245_v7 = vld [vmem:[%s1560_s26 + $0x30] sm:$0xff]  ;;  %v246_v8 = vld [vmem:[%s1560_s26 + $0x38] sm:$0xff]  ;;  %v247_v9 = vld [vmem:[%s1560_s26 + $0x40] sm:$0xff] }
  0x16   : > { %1373 = vmatprep.mubr.msk.f32.mxu0 %vm263_vm1, %v241_v3  ;;  %v248_v10 = vld [vmem:[%s1560_s26 + $0x48] sm:$0xff]  ;;  %v249_v11 = vld [vmem:[%s1560_s26 + $0x50] sm:$0xff]  ;;  %v250_v12 = vld [vmem:[%s1560_s26 + $0x58] sm:$0xff] }
  0x17   : > { %v251_v13 = vld [vmem:[%s1560_s26 + $0x60] sm:$0xff]  ;;  %v252_v14 = vld [vmem:[%s1560_s26 + $0x68] sm:$0xff]  ;;  %v253_v15 = vld [vmem:[%s1560_s26 + $0x70] sm:$0xff] }
  0x18   : > { %v254_v16 = vld [vmem:[%s1560_s26 + $0x78] sm:$0xff] }
  0x19   : > { %1374 = vmatmul.mubr.msk.f32.gmra.mrb[2].mxu0 %vm263_vm1, %v242_v4 }
  0x1a   : > { %1376 = vmatprep.mubr.msk.f32.mxu0 %vm263_vm1, %v243_v5 }
  0x1d   : > { %1377 = vmatmul.mubr.msk.f32.gmra.mrb[4].mxu0 %vm263_vm1, %v244_v6 }
  0x1e   : > { %1379 = vmatprep.mubr.msk.f32.mxu0 %vm263_vm1, %v245_v7 }
  0x21   : > { %1380 = vmatmul.mubr.msk.f32.gmra.mrb[6].mxu0 %vm263_vm1, %v246_v8 }
  0x22   : > { %1382 = vmatprep.mubr.msk.f32.mxu0 %vm263_vm1, %v247_v9 }
  0x25   : > { %1383 = vmatmul.mubr.msk.f32.gmra.mrb[8].mxu0 %vm263_vm1, %v248_v10 }
  0x26   : > { %1385 = vmatprep.mubr.msk.f32.mxu0 %vm263_vm1, %v249_v11 }
  0x29   : > { %1386 = vmatmul.mubr.msk.f32.gmra.mrb[10].mxu0 %vm263_vm1, %v250_v12 }
  0x2a   : > { %1388 = vmatprep.mubr.msk.f32.mxu0 %vm263_vm1, %v251_v13 }
  0x2d   : > { %1389 = vmatmul.mubr.msk.f32.gmra.mrb[12].mxu0 %vm263_vm1, %v252_v14 }
  0x2e   : > { %1391 = vmatprep.mubr.msk.f32.mxu0 %vm263_vm1, %v253_v15 }
  0x31   : > { %1392 = vmatmul.mubr.msk.f32.gmra.mrb[14].mxu0 %vm263_vm1, %v254_v16 }
  0xe8   : > { %v1372_v21 = vpop.f32.mrb[0].mxu0 }
  0xe9   : > { %v1606_v22 = vadd.f32 %v1372_v21, %v1603_v20  ;;  %v382_v23 = vpop.f32.mrb[1].mxu0 }
  0xea   : > { %v383_v58 = vadd.f32 %v1603_v20, %v382_v23 }
  0xeb   : > { %v1609_v24 = vmul.f32 0.70710677, %v1606_v22 }
  0xec   : > { %v1375_v25 = vpop.f32.mrb[2].mxu0  ;;  %v1686_v5 = vmul.f32 0.70710677, %v383_v58 }
  0xed   : > { %v1612_v26 = vand.u32 2147483647, %v1609_v24  ;;  %v1615_v27 = vadd.f32 %v1375_v25, %v1603_v20  ;;  %v392_v28 = vpop.f32.mrb[3].mxu0  ;;  %vm494_vm2 = vcmp.ge.f32.partialorder %v1609_v24, 0.0 }
  0xee   : > { %v1618_v29 = vadd.f32 %v1603_v20, %v392_v28  ;;  %v525_v13 = vand.u32 2147483647, %v1686_v5  ;;  %vm493_vm10 = vcmp.ge.f32.partialorder %v1686_v5, 0.0 }
  0xef   : > { %v1621_v30 = vmul.f32 0.70710677, %v1615_v27  ;;  %v542_v31 = vmul.f32 0.3275911, %v1612_v26  ;;  %v750_v15 = vsub.f32 0.0, %v1612_v26 }
  0xf0   : > { %v1625_v32 = vmul.f32 0.70710677, %v1618_v29  ;;  %v1378_v33 = vpop.f32.mrb[4].mxu0  ;;  %v749_v21 = vsub.f32 0.0, %v525_v13  ;;  %v541_v28 = vmul.f32 0.3275911, %v525_v13 }
  0xf1   : > { %v1628_v34 = vand.u32 2147483647, %v1621_v30  ;;  %v402_v35 = vpop.f32.mrb[5].mxu0  ;;  %v558_v36 = vadd.f32 1.0, %v542_v31  ;;  %v1634_v39 = vadd.f32 %v1378_v33, %v1603_v20  ;;  %vm496_vm3 = vcmp.ge.f32.partialorder %v1621_v30, 0.0 }
  0xf2   : > { %v1631_v37 = vand.u32 2147483647, %v1625_v32  ;;  %v1642_v44 = vadd.f32 %v1603_v20, %v402_v35  ;;  %v1711_v35 = vmul.f32 0.5, %v1606_v22  ;;  %vm495_vm4 = vcmp.ge.f32.partialorder %v1625_v32, 0.0 }
  0xf3   : > { %v544_v41 = vmul.f32 0.3275911, %v1628_v34  ;;  %v1639_v43 = vmul.f32 0.70710677, %v1634_v39  ;;  %1435 = vrcp.f32 %v558_v36  ;;  %v752_v31 = vsub.f32 0.0, %v1628_v34 }
  0xf4   : > { %v1381_v38 = vpop.f32.mrb[6].mxu0  ;;  %v543_v42 = vmul.f32 0.3275911, %v1631_v37  ;;  %v1648_v50 = vmul.f32 0.70710677, %v1642_v44  ;;  %v766_v36 = vmul.f32 %v750_v15, %v1612_v26 }
  0xf5   : > { %v412_v40 = vpop.f32.mrb[7].mxu0  ;;  %v560_v48 = vadd.f32 1.0, %v544_v41  ;;  %v1645_v49 = vand.u32 2147483647, %v1639_v43  ;;  %v1651_v51 = vadd.f32 %v1381_v38, %v1603_v20  ;;  %v1714_v38 = vmul.f32 0.5, %v383_v58 }
  0xf6   : > { %v559_v45 = vadd.f32 1.0, %v543_v42  ;;  %v1656_v53 = vadd.f32 %v1603_v20, %v412_v40  ;;  %v1662_v56 = vand.u32 2147483647, %v1648_v50  ;;  %v2163_v42 = vmov -1.0  }
  0xf7   : > { %v546_v55 = vmul.f32 0.3275911, %v1645_v49  ;;  %v1665_v57 = vmul.f32 0.70710677, %v1651_v51  ;;  %v768_v58 = vmul.f32 %v752_v31, %v1628_v34  ;;  %v1753_v15 = vsel %vm495_vm4, 1.0, %v2163_v42 }
  0xf8   : > { %v1384_v46 = vpop.f32.mrb[8].mxu0  ;;  %1437 = vrcp.f32 %v559_v45  ;;  %v1669_v59 = vmul.f32 0.70710677, %v1656_v53  ;;  %v545_v0 = vmul.f32 0.3275911, %v1662_v56  ;;  %v1721_v45 = vsel %vm494_vm2, 1.0, %v2163_v42 }
  0xf9   : > { %v422_v47 = vpop.f32.mrb[9].mxu0  ;;  %1439 = vrcp.f32 %v560_v48  ;;  %v562_v62 = vadd.f32 1.0, %v546_v55  ;;  %v1679_v1 = vand.u32 2147483647, %v1665_v57  ;;  %v1704_v25 = vadd.f32 %v1384_v46, %v1603_v20 }
  0xfa   : > { %v1689_v6 = vand.u32 2147483647, %v1669_v59  ;;  %v561_v8 = vadd.f32 1.0, %v545_v0  ;;  %v1708_v33 = vadd.f32 %v1603_v20, %v422_v47  ;;  %v751_v47 = vsub.f32 0.0, %v1631_v37 }
  0xfb   : > { %1441 = vrcp.f32 %v562_v62  ;;  %v548_v11 = vmul.f32 0.3275911, %v1679_v1  ;;  %2173 = vst [vmem:[#allocation2_spill] sm:$0xff] %v1704_v25  ;;  %v765_v48 = vmul.f32 %v749_v21, %v525_v13  ;;  %v1726_v26 = vmul.f32 0.70710677, %v1704_v25 }
  0xfc   : > { %v1653_v52 = vpop.f32.mrb[10].mxu0  ;;  %v547_v14 = vmul.f32 0.3275911, %v1689_v6  ;;  %1443 = vrcp.f32 %v561_v8  ;;  %v557_v55 = vadd.f32 1.0, %v541_v28  ;;  %v1731_v24 = vmul.f32 0.70710677, %v1708_v33 }
  0xfd   : > { %v1658_v54 = vpop.f32.mrb[11].mxu0  ;;  %v1673_v61 = vpop.eup %1435  ;;  %v564_v18 = vadd.f32 1.0, %v548_v11  ;;  %v783_v62 = vmul.f32 1.442695, %v766_v36  ;;  %v1737_v8 = vmul.f32 0.5, %v1615_v27  ;;  %v767_v30 = vmul.f32 %v751_v47, %v1631_v37 }
  0xfe   : > { %v606_v4 = vmul.f32 1.0614054, %v1673_v61  ;;  %v563_v23 = vadd.f32 1.0, %v547_v14  ;;  %v781_v13 = vmul.f32 1.442695, %v765_v48  ;;  %v1747_v14 = vsel %vm496_vm3, 1.0, %v2163_v42 }
  0xff   : > { %1445 = vrcp.f32 %v564_v18  ;;  %v1750_v32 = vand.u32 2147483647, %v1726_v26  ;;  %v787_v27 = vmul.f32 1.442695, %v768_v58  ;;  %vm498_vm5 = vcmp.ge.f32.partialorder %v1639_v43, 0.0 }
 0x100   : > { %v1671_v60 = vpop.f32.mrb[12].mxu0  ;;  %v622_v12 = vadd.f32 -1.4531521, %v606_v4  ;;  %1447 = vrcp.f32 %v563_v23  ;;  %v785_v18 = vmul.f32 1.442695, %v767_v30  ;;  %vm497_vm6 = vcmp.ge.f32.partialorder %v1648_v50, 0.0 }
 0x101   : > { %v1675_v63 = vpop.f32.mrb[13].mxu0  ;;  %1449 = vrcp.f32 %v557_v55  ;;  %v754_v23 = vsub.f32 0.0, %v1645_v49  ;;  %v550_v28 = vmul.f32 0.3275911, %v1750_v32  ;;  %v1767_v36 = vmul.f32 0.5, %v1634_v39 }
 0x102   : > { %v1683_v3 = vpop.eup %1437  ;;  %v638_v19 = vmul.f32 %v1673_v61, %v622_v12  ;;  %1451 = vpow2.f32 %v783_v62  ;;  %v1783_v55 = vsel %vm497_vm6, 1.0, %v2163_v42  ;;  %v753_v58 = vsub.f32 0.0, %v1662_v56 }
 0x103   : > { %v1693_v9 = vpop.eup %1439  ;;  %v607_v10 = vmul.f32 1.0614054, %v1683_v3  ;;  %1453 = vpow2.f32 %v781_v13  ;;  %v756_v43 = vsub.f32 0.0, %v1679_v1  ;;  %v1793_v13 = vadd.f32 %v1653_v52, %v1603_v20 }
 0x104   : > { %v1681_v2 = vpop.f32.mrb[14].mxu0  ;;  %v608_v16 = vmul.f32 1.0614054, %v1693_v9  ;;  %v654_v22 = vadd.f32 1.4214138, %v638_v19  ;;  %1455 = vpow2.f32 %v787_v27  ;;  %vm500_vm7 = vcmp.ge.f32.partialorder %v1665_v57, 0.0 }
 0x105   : > { %v1691_v7 = vpop.f32.mrb[15].mxu0  ;;  %v623_v17 = vadd.f32 -1.4531521, %v607_v10  ;;  %v1716_v41 = vpop.eup %1441  ;;  %v1740_v10 = vmul.f32 0.5, %v1618_v29  ;;  %v1756_v29 = vand.u32 2147483647, %v1731_v24  ;;  %1457 = vpow2.f32 %v785_v18 }
 0x106   : > { %v624_v40 = vadd.f32 -1.4531521, %v608_v16  ;;  %v610_v4 = vmul.f32 1.0614054, %v1716_v41  ;;  %v1743_v34 = vpop.eup %1443  ;;  %v670_v12 = vmul.f32 %v1673_v61, %v654_v22  ;;  %v1779_v22 = vsel %vm498_vm5, 1.0, %v2163_v42  ;;  %2174 = vst [vmem:[#allocation3_spill] sm:$0xff] %v1793_v13 }
 0x107   : > { %v639_v46 = vmul.f32 %v1683_v3, %v623_v17  ;;  %v609_v19 = vmul.f32 1.0614054, %v1743_v34  ;;  %vm499_vm8 = vcmp.ge.f32.partialorder %v1669_v59, 0.0  ;;  %vm501_vm9 = vcmp.ge.f32.partialorder %v1731_v24, 0.0 }
 0x108   : > { %v640_v0 = vmul.f32 %v1693_v9, %v624_v40  ;;  %v626_v16 = vadd.f32 -1.4531521, %v610_v4  ;;  %v686_v21 = vadd.f32 -0.28449672, %v670_v12  ;;  %v1770_v40 = vmul.f32 0.5, %v1642_v44 }
 0x109   : > { %v655_v11 = vadd.f32 1.4214138, %v639_v46  ;;  %v1764_v31 = vpop.eup %1445  ;;  %v549_v46 = vmul.f32 0.3275911, %v1756_v29  ;;  %v625_v44 = vadd.f32 -1.4531521, %v609_v19  ;;  %v769_v19 = vmul.f32 %v753_v58, %v1662_v56 }
 0x10a   : > { %v656_v37 = vadd.f32 1.4214138, %v640_v0  ;;  %v1773_v50 = vpop.eup %1447  ;;  %v642_v48 = vmul.f32 %v1716_v41, %v626_v16  ;;  %v702_v62 = vmul.f32 %v1673_v61, %v686_v21  ;;  %v770_v0 = vmul.f32 %v754_v23, %v1645_v49 }
 0x10b   : > { %v671_v17 = vmul.f32 %v1683_v3, %v655_v11  ;;  %v612_v4 = vmul.f32 1.0614054, %v1764_v31  ;;  %v566_v11 = vadd.f32 1.0, %v550_v28  ;;  %v611_v30 = vmul.f32 1.0614054, %v1773_v50  ;;  %v1799_v49 = vpop.eup %1449 }
 0x10c   : > { %v672_v47 = vmul.f32 %v1693_v9, %v656_v37  ;;  %v565_v12 = vadd.f32 1.0, %v549_v46  ;;  %v658_v37 = vadd.f32 1.4214138, %v642_v48  ;;  %v1797_v16 = vmul.f32 0.5, %v1656_v53  ;;  %v1452_v23 = vpop.eup %1451 }
 0x10d   : > { %v687_v39 = vadd.f32 -0.28449672, %v671_v17  ;;  %v641_v18 = vmul.f32 %v1743_v34, %v625_v44  ;;  %v755_v21 = vsub.f32 0.0, %v1689_v6  ;;  %v718_v52 = vadd.f32 0.2548296, %v702_v62 }
 0x10e   : > { %v688_v27 = vadd.f32 -0.28449672, %v672_v47  ;;  %v628_v28 = vadd.f32 -1.4531521, %v612_v4  ;;  %1459 = vrcp.f32 %v566_v11  ;;  %v1806_v46 = vmul.f32 0.70710677, %v1793_v13 }
 0x10f   : > { %v703_v17 = vmul.f32 %v1683_v3, %v687_v39  ;;  %v772_v53 = vmul.f32 %v756_v43, %v1679_v1  ;;  %v627_v47 = vadd.f32 -1.4531521, %v611_v30  ;;  %1461 = vrcp.f32 %v565_v12  ;;  %v1813_v39 = vpop.eup %1453 }
 0x110   : > { %v1811_v48 = vadd.f32 %v1603_v20, %v1658_v54  ;;  %v704_v56 = vmul.f32 %v1693_v9, %v688_v27  ;;  %v674_v44 = vmul.f32 %v1716_v41, %v658_v37  ;;  %v791_v58 = vmul.f32 1.442695, %v770_v0  ;;  %v1456_v4 = vpop.eup %1455 }
 0x111   : > { %v1820_v62 = vsel %vm500_vm7, 1.0, %v2163_v42  ;;  %v719_v1 = vadd.f32 0.2548296, %v703_v17  ;;  %v657_v11 = vadd.f32 1.4214138, %v641_v18  ;;  %v771_v30 = vmul.f32 %v755_v21, %v1689_v6  ;;  %v1458_v0 = vpop.eup %1457 }
 0x112   : > { %2175 = vst [vmem:[#allocation4_spill] sm:$0xff] %v1811_v48  ;;  %v789_v43 = vmul.f32 1.442695, %v769_v19  ;;  %v734_v54 = vmul.f32 %v1673_v61, %v718_v52  ;;  %v644_v12 = vmul.f32 %v1764_v31, %v628_v28  ;;  %v758_v27 = vsub.f32 0.0, %v1750_v32 }
 0x113   : > { %v1827_v37 = vand.u32 2147483647, %v1806_v46  ;;  %v795_v13 = vmul.f32 1.442695, %v772_v53  ;;  %v643_v57 = vmul.f32 %v1773_v50, %v627_v47  ;;  %v1832_v17 = vmul.f32 0.70710677, %v1811_v48 }
 0x114   : > { %v720_v18 = vadd.f32 0.2548296, %v704_v56  ;;  %v690_v6 = vadd.f32 -0.28449672, %v674_v44  ;;  %1463 = vpow2.f32 %v791_v58  ;;  %v735_v19 = vmul.f32 %v1683_v3, %v719_v1 }
 0x115   : > { %v552_v61 = vmul.f32 0.3275911, %v1827_v37  ;;  %v673_v21 = vmul.f32 %v1743_v34, %v657_v11  ;;  %1465 = vpow2.f32 %v789_v43  ;;  %v793_v52 = vmul.f32 1.442695, %v771_v30 }
 0x116   : > { %v814_v28 = vmul.f32 %v1452_v23, %v734_v54  ;;  %v660_v53 = vadd.f32 1.4214138, %v644_v12  ;;  %v774_v42 = vmul.f32 %v758_v27, %v1750_v32  ;;  %1467 = vpow2.f32 %v795_v13 }
 0x117   : > { %v568_v25 = vadd.f32 1.0, %v552_v61  ;;  %v2176_v47 = vmov -1.0   ;;  %v659_v44 = vadd.f32 1.4214138, %v643_v57  ;;  %v1844_v58 = vand.u32 2147483647, %v1832_v17 }
 0x118   : > { %v1841_v56 = vsel %vm499_vm8, 1.0, %v2176_v47  ;;  %v1846_v3 = vpop.eup %1459  ;;  %v736_v1 = vmul.f32 %v1693_v9, %v720_v18  ;;  %v706_v23 = vmul.f32 %v1716_v41, %v690_v6  ;;  %v1852_v32 = vadd.f32 %v1671_v60, %v1603_v20 }
 0x119   : > { %1469 = vrcp.f32 %v568_v25  ;;  %v1854_v13 = vpop.eup %1461  ;;  %v815_v59 = vmul.f32 %v1458_v0, %v735_v19  ;;  %v689_v11 = vadd.f32 -0.28449672, %v673_v21  ;;  %v551_v43 = vmul.f32 0.3275911, %v1844_v58 }
 0x11a   : > { %2177 = vst [vmem:[#allocation5_spill] sm:$0xff] %v1852_v32  ;;  %1471 = vpow2.f32 %v793_v52  ;;  %v830_v30 = vsub.f32 1.0, %v814_v28  ;;  %v676_v54 = vmul.f32 %v1764_v31, %v660_v53  ;;  %v799_v12 = vmul.f32 1.442695, %v774_v42 }
 0x11b   : > { %v1859_v9 = vmul.f32 0.70710677, %v1852_v32  ;;  %v675_v25 = vmul.f32 %v1773_v50, %v659_v44  ;;  %v614_v27 = vmul.f32 1.0614054, %v1846_v3  ;;  %v567_v60 = vadd.f32 1.0, %v551_v43 }
 0x11c   : > { %v1865_v57 = vadd.f32 %v1603_v20, %v1675_v63  ;;  %v816_v0 = vmul.f32 %v1456_v4, %v736_v1  ;;  %v722_v18 = vadd.f32 0.2548296, %v706_v23  ;;  %v613_v6 = vmul.f32 1.0614054, %v1854_v13 }
 0x11d   : > { %v1869_v61 = vand.u32 2147483647, %v1859_v9  ;;  %v831_v42 = vsub.f32 1.0, %v815_v59  ;;  %v705_v19 = vmul.f32 %v1743_v34, %v689_v11  ;;  %1473 = vrcp.f32 %v567_v60 }
 0x11e   : > { %2178 = vst [vmem:[#allocation6_spill] sm:$0xff] %v1865_v57  ;;  %v1464_v21 = vpop.eup %1463  ;;  %v846_v52 = vmul.f32 %v830_v30, %v1721_v45  ;;  %v692_v28 = vadd.f32 -0.28449672, %v676_v54  ;;  %v1877_v4 = vadd.f32 %v1681_v2, %v1603_v20  ;;  %v691_v44 = vadd.f32 -0.28449672, %v675_v25 }
 0x11f   : > { %v554_v63 = vmul.f32 0.3275911, %v1869_v61  ;;  %v1466_v53 = vpop.eup %1465  ;;  %v630_v1 = vadd.f32 -1.4531521, %v614_v27  ;;  %1475 = vpow2.f32 %v799_v12  ;;  %v1880_v23 = vmul.f32 0.70710677, %v1865_v57 }
 0x120   : > { %2179 = vst [vmem:[#allocation7_spill] sm:$0xff] %v1877_v4  ;;  %v832_v59 = vsub.f32 1.0, %v816_v0  ;;  %v738_v11 = vmul.f32 %v1716_v41, %v722_v18  ;;  %v629_v43 = vadd.f32 -1.4531521, %v613_v6  ;;  %v1883_v45 = vpop.eup %1467  ;;  %v847_v30 = vmul.f32 %v831_v42, %v1753_v15 }
 0x121   : > { %v570_v60 = vadd.f32 1.0, %v554_v63  ;;  %v721_v54 = vadd.f32 0.2548296, %v705_v19  ;;  %v1889_v2 = vsel %vm501_vm9, 1.0, %v2176_v47  ;;  %v1892_v12 = vand.u32 2147483647, %v1880_v23 }
 0x122   : > { %v862_v27 = vadd.f32 1.0, %v846_v52  ;;  %v1897_v41 = vmul.f32 0.70710677, %v1877_v4  ;;  %v1901_v0 = vadd.f32 %v1603_v20, %v1691_v7  ;;  %v708_v18 = vmul.f32 %v1764_v31, %v692_v28 }
 0x123   : > { %v1894_v25 = vpop.eup %1469  ;;  %1477 = vrcp.f32 %v570_v60  ;;  %v707_v24 = vmul.f32 %v1773_v50, %v691_v44  ;;  %v646_v6 = vmul.f32 %v1846_v3, %v630_v1  ;;  %v553_v42 = vmul.f32 0.3275911, %v1892_v12 }
 0x124   : > { %2180 = vst [vmem:[#allocation8_spill] sm:$0xff] %v1897_v41  ;;  %2181 = vst [vmem:[#allocation9_spill] sm:$0xff] %v1901_v0  ;;  %v1472_v15 = vpop.eup %1471  ;;  %v848_v19 = vmul.f32 %v832_v59, %v1747_v14  ;;  %v818_v52 = vmul.f32 %v1464_v21, %v738_v11  ;;  %v645_v63 = vmul.f32 %v1854_v13, %v629_v43  ;;  %v1910_v60 = vand.u32 2147483647, %v1897_v41 }
 0x125   : > { %v863_v4 = vadd.f32 1.0, %v847_v30  ;;  %v737_v20 = vmul.f32 %v1743_v34, %v721_v54  ;;  %v616_v7 = vmul.f32 1.0614054, %v1894_v25  ;;  %v569_v28 = vadd.f32 1.0, %v553_v42 }
 0x126   : > { %v1915_v44 = vmul.f32 %v862_v27, %v1711_v35  ;;  %v757_v1 = vsub.f32 0.0, %v1756_v29  ;;  %v556_v32 = vmul.f32 0.3275911, %v1910_v60  ;;  %v1920_v14 = vmul.f32 0.70710677, %v1901_v0 }
 0x127   : > { %v1922_v21 = vpop.eup %1473  ;;  %v724_v59 = vadd.f32 0.2548296, %v708_v18  ;;  %v723_v11 = vadd.f32 0.2548296, %v707_v24  ;;  %v662_v43 = vadd.f32 1.4214138, %v646_v6  ;;  %1479 = vrcp.f32 %v569_v28 }
 0x128   : > { %2182 = vst [vmem:[#allocation10_spill] sm:$0xff] %v1920_v14  ;;  %v834_v34 = vsub.f32 1.0, %v818_v52  ;;  %v661_v30 = vadd.f32 1.4214138, %v645_v63  ;;  %v615_v54 = vmul.f32 1.0614054, %v1922_v21  ;;  %v1930_v57 = vmul.f32 %v863_v4, %v1740_v10 }
 0x129   : > { %v572_v42 = vadd.f32 1.0, %v556_v32  ;;  %v1925_v35 = vpop.eup %1475  ;;  %v1927_v27 = vadd.f32 1.0, %v848_v19  ;;  %v817_v0 = vmul.f32 %v1466_v53, %v737_v20  ;;  %v632_v41 = vadd.f32 -1.4531521, %v616_v7 }
 0x12a   : > { %v773_v48 = vmul.f32 %v757_v1, %v1756_v29  ;;  %v631_v18 = vadd.f32 -1.4531521, %v615_v54  ;;  %v1934_v24 = vand.u32 2147483647, %v1920_v14  ;;  %v740_v6 = vmul.f32 %v1764_v31, %v724_v59 }
 0x12b   : > { %1481 = vrcp.f32 %v572_v42  ;;  %v739_v32 = vmul.f32 %v1773_v50, %v723_v11  ;;  %v678_v52 = vmul.f32 %v1846_v3, %v662_v43  ;;  %v605_v19 = vmul.f32 1.0614054, %v1799_v49 }
 0x12c   : > { %v1943_v10 = vmul.f32 %v834_v34, %v1779_v22  ;;  %v677_v29 = vmul.f32 %v1854_v13, %v661_v30  ;;  %v647_v4 = vmul.f32 %v1922_v21, %v631_v18  ;;  %v555_v53 = vmul.f32 0.3275911, %v1934_v24 }
 0x12d   : > { %v1940_v63 = vpop.eup %1477  ;;  %v833_v20 = vsub.f32 1.0, %v817_v0  ;;  %v648_v31 = vmul.f32 %v1894_v25, %v632_v41  ;;  %v621_v7 = vadd.f32 -1.4531521, %v605_v19  ;;  %v797_v28 = vmul.f32 1.442695, %v773_v48 }
 0x12e   : > { %v618_v50 = vmul.f32 1.0614054, %v1940_v63  ;;  %v663_v1 = vadd.f32 1.4214138, %v647_v4  ;;  %v759_v59 = vsub.f32 0.0, %v1844_v58  ;;  %v571_v11 = vadd.f32 1.0, %v555_v53 }
 0x12f   : > { %v1951_v43 = vmul.f32 %v1472_v15, %v739_v32  ;;  %v694_v22 = vadd.f32 -0.28449672, %v678_v52  ;;  %v637_v30 = vmul.f32 %v1799_v49, %v621_v7  ;;  %v1955_v54 = vmul.f32 %v1883_v45, %v740_v6 }
 0x130   : > { %v634_v34 = vadd.f32 -1.4531521, %v618_v50  ;;  %v693_v0 = vadd.f32 -0.28449672, %v677_v29  ;;  %v761_v41 = vsub.f32 0.0, %v1892_v12  ;;  %1483 = vrcp.f32 %v571_v11 }
 0x131   : > { %v1958_v42 = vpop.eup %1479  ;;  %v1961_v48 = vmul.f32 %v833_v20, %v1783_v55  ;;  %v664_v18 = vadd.f32 1.4214138, %v648_v31  ;;  %v679_v15 = vmul.f32 %v1922_v21, %v663_v1  ;;  %v653_v32 = vadd.f32 1.4214138, %v637_v30 }
 0x132   : > { %v760_v52 = vsub.f32 0.0, %v1827_v37  ;;  %v775_v19 = vmul.f32 %v759_v59, %v1844_v58  ;;  %v650_v45 = vmul.f32 %v1940_v63, %v634_v34  ;;  %v617_v6 = vmul.f32 1.0614054, %v1958_v42 }
 0x133   : > { %v710_v4 = vmul.f32 %v1846_v3, %v694_v22  ;;  %1485 = vpow2.f32 %v797_v28  ;;  %v669_v55 = vmul.f32 %v1799_v49, %v653_v32  ;;  %v709_v20 = vmul.f32 %v1854_v13, %v693_v0 }
 0x134   : > { %v762_v31 = vsub.f32 0.0, %v1869_v61  ;;  %v633_v50 = vadd.f32 -1.4531521, %v617_v6  ;;  %v777_v58 = vmul.f32 %v761_v41, %v1892_v12  ;;  %v680_v7 = vmul.f32 %v1894_v25, %v664_v18 }
 0x135   : > { %v1971_v53 = vpop.eup %1481  ;;  %v695_v1 = vadd.f32 -0.28449672, %v679_v15  ;;  %v685_v11 = vadd.f32 -0.28449672, %v669_v55  ;;  %v776_v28 = vmul.f32 %v760_v52, %v1827_v37  ;;  %v801_v22 = vmul.f32 1.442695, %v775_v19 }
 0x136   : > { %v620_v59 = vmul.f32 1.0614054, %v1971_v53  ;;  %v666_v34 = vadd.f32 1.4214138, %v650_v45  ;;  %v649_v30 = vmul.f32 %v1958_v42, %v633_v50  ;;  %v726_v0 = vadd.f32 0.2548296, %v710_v4 }
 0x137   : > { %v763_v6 = vsub.f32 0.0, %v1934_v24  ;;  %v701_v12 = vmul.f32 %v1799_v49, %v685_v11  ;;  %v725_v41 = vadd.f32 0.2548296, %v709_v20  ;;  %v778_v29 = vmul.f32 %v762_v31, %v1869_v61 }
 0x138   : > { %v636_v32 = vadd.f32 -1.4531521, %v620_v59  ;;  %v665_v18 = vadd.f32 1.4214138, %v649_v30  ;;  %v805_v15 = vmul.f32 1.442695, %v777_v58  ;;  %v711_v55 = vmul.f32 %v1922_v21, %v695_v1 }
 0x139   : > { %v696_v14 = vadd.f32 -0.28449672, %v680_v7  ;;  %v717_v52 = vadd.f32 0.2548296, %v701_v12  ;;  %v803_v45 = vmul.f32 1.442695, %v776_v28  ;;  %1487 = vpow2.f32 %v801_v22 }
 0x13a   : > { %v652_v37 = vmul.f32 %v1971_v53, %v636_v32  ;;  %v1986_v19 = vpop.eup %1483  ;;  %v682_v4 = vmul.f32 %v1940_v63, %v666_v34  ;;  %v681_v50 = vmul.f32 %v1958_v42, %v665_v18  ;;  %v764_v20 = vsub.f32 0.0, %v1910_v60 }
 0x13b   : > { %v779_v61 = vmul.f32 %v763_v6, %v1934_v24  ;;  %v733_v31 = vmul.f32 %v1799_v49, %v717_v52  ;;  %v741_v58 = vmul.f32 %v1854_v13, %v725_v41  ;;  %v807_v7 = vmul.f32 1.442695, %v778_v29 }
 0x13c   : > { %v668_v59 = vadd.f32 1.4214138, %v652_v37  ;;  %v697_v1 = vadd.f32 -0.28449672, %v681_v50  ;;  %v619_v11 = vmul.f32 1.0614054, %v1986_v19  ;;  %v712_v22 = vmul.f32 %v1894_v25, %v696_v14 }
 0x13d   : > { %v1486_v28 = vpop.eup %1485  ;;  %v727_v34 = vadd.f32 0.2548296, %v711_v55  ;;  %1489 = vpow2.f32 %v805_v15  ;;  %v813_v30 = vmul.f32 %v1813_v39, %v733_v31  ;;  %v698_v32 = vadd.f32 -0.28449672, %v682_v4 }
 0x13e   : > { %v713_v12 = vmul.f32 %v1958_v42, %v697_v1  ;;  %v684_v24 = vmul.f32 %v1971_v53, %v668_v59  ;;  %v635_v49 = vadd.f32 -1.4531521, %v619_v11  ;;  %1491 = vpow2.f32 %v803_v45 }
 0x13f   : > { %v780_v13 = vmul.f32 %v764_v20, %v1910_v60  ;;  %v809_v29 = vmul.f32 1.442695, %v779_v61  ;;  %v829_v6 = vsub.f32 1.0, %v813_v30  ;;  %vm502_vm12 = vcmp.ge.f32.partialorder %v1726_v26, 0.0 }
 0x140   : > { %v742_v41 = vmul.f32 %v1846_v3, %v726_v0  ;;  %1493 = vpow2.f32 %v807_v7  ;;  %v651_v14 = vmul.f32 %v1986_v19, %v635_v49  ;;  %v509_v39 = vsel %vm493_vm10, 1.0, %v2176_v47 }
 0x141   : > { %v821_v18 = vmul.f32 %v1486_v28, %v741_v58  ;;  %v743_v15 = vmul.f32 %v1922_v21, %v727_v34  ;;  %v729_v55 = vadd.f32 0.2548296, %v713_v12  ;;  %v845_v37 = vmul.f32 %v829_v6, %v509_v39 }
 0x142   : > { %v728_v52 = vadd.f32 0.2548296, %v712_v22  ;;  %v714_v60 = vmul.f32 %v1940_v63, %v698_v32  ;;  %v700_v45 = vadd.f32 -0.28449672, %v684_v24  ;;  %v667_v4 = vadd.f32 1.4214138, %v651_v14 }
 0x143   : > { %v836_v50 = vsub.f32 1.0, %v1955_v54  ;;  %v811_v3 = vmul.f32 1.442695, %v780_v13  ;;  %1495 = vpow2.f32 %v809_v29  ;;  %v861_v0 = vadd.f32 1.0, %v845_v37  ;;  %v1488_v59 = vpop.eup %1487 }
 0x144   : > { %v865_v20 = vadd.f32 1.0, %v1961_v48  ;;  %v2183_v5 = vsub.f32 1.0, %v1951_v43  ;;  %v822_v21 = vmul.f32 %v1925_v35, %v742_v41  ;;  %v683_v31 = vmul.f32 %v1986_v19, %v667_v4 }
 0x145   : > { %v837_v58 = vsub.f32 1.0, %v821_v18  ;;  %v823_v7 = vmul.f32 %v1488_v59, %v743_v15  ;;  %v745_v1 = vmul.f32 %v1958_v42, %v729_v55  ;;  %v877_v54 = vmul.f32 %v861_v0, %v1714_v38  ;;  %v2185_v0 = vld [vmem:[#allocation2_spill] sm:$0xff] }
 0x146   : > { %v851_v61 = vmul.f32 %v2183_v5, %v1841_v56  ;;  %v744_v11 = vmul.f32 %v1894_v25, %v728_v52  ;;  %v730_v28 = vadd.f32 0.2548296, %v714_v60  ;;  %v716_v22 = vmul.f32 %v1971_v53, %v700_v45  ;;  %v2184_v52 = vld [vmem:[#allocation10_spill] sm:$0xff] }
 0x147   : > { %v699_v48 = vadd.f32 -0.28449672, %v683_v31  ;;  %v1490_v34 = vpop.eup %1489  ;;  %v880_v56 = vmul.f32 %v1927_v27, %v1737_v8  ;;  %v866_v35 = vadd.f32 1.0, %v1943_v10  ;;  %v852_v43 = vmul.f32 %v836_v50, %v1820_v62  ;;  %1398 = vmatprep.mubr.msk.f32.mxu1 %vm895_vm11, %v877_v54 }
 0x148   : > { %1497 = vpow2.f32 %v811_v3  ;;  %v881_v42 = vmul.f32 %v865_v20, %v1770_v40  ;;  %v867_v38 = vadd.f32 1.0, %v851_v61  ;;  %v838_v30 = vsub.f32 1.0, %v822_v21  ;;  %1399 = vmatmul.mubr.msk.f32.vlgmr.msra.gmra.mrb[0].mxu1 %vm895_vm11, %v1915_v44  ;;  %v1492_v32 = vpop.eup %1491  ;;  %v2186_v20 = vld [vmem:[#allocation4_spill] sm:$0xff] }
 0x149   : > { %v715_v25 = vmul.f32 %v1986_v19, %v699_v48  ;;  %v853_v12 = vmul.f32 %v837_v58, %v1889_v2  ;;  %vm503_vm13 = vcmp.ge.f32.partialorder %v1832_v17, 0.0  ;;  %v839_v8 = vsub.f32 1.0, %v823_v7  ;;  %1401 = vmatprep.mubr.msk.f32.mxu1 %vm895_vm11, %v1930_v57  ;;  %v2188_v48 = vld [vmem:[#allocation6_spill] sm:$0xff] }
 0x14a   : > { %v825_v27 = vmul.f32 %v1490_v34, %v745_v1  ;;  %v1494_v62 = vpop.eup %1493  ;;  %v824_v10 = vmul.f32 %v1492_v32, %v744_v11  ;;  %v746_v40 = vmul.f32 %v1940_v63, %v730_v28  ;;  %v732_v24 = vadd.f32 0.2548296, %v716_v22  ;;  %v2187_v28 = vld [vmem:[#allocation8_spill] sm:$0xff]  ;;  %v2190_v32 = vld [vmem:[#allocation9_spill] sm:$0xff] }
 0x14b   : > { %v731_v49 = vadd.f32 0.2548296, %v715_v25  ;;  %v882_v13 = vmul.f32 %v866_v35, %v1767_v36  ;;  %v868_v29 = vadd.f32 1.0, %v852_v43  ;;  %v518_v2 = vsel %vm502_vm12, 1.0, %v2176_v47 }
 0x14c   : > { %vm504_vm14 = vcmp.ge.f32.partialorder %v1806_v46, 0.0  ;;  %v883_v17 = vmul.f32 %v867_v38, %v1797_v16  ;;  %v854_v44 = vmul.f32 %v838_v30, %v518_v2  ;;  %v519_v57 = vsel %vm503_vm13, 1.0, %v2176_v47  ;;  %1402 = vmatmul.mubr.msk.f32.gmra.mrb[2].mxu1 %vm895_vm11, %v880_v56  ;;  %v2189_v56 = vld [vmem:[#allocation3_spill] sm:$0xff] }
 0x14d   : > { %v747_v6 = vmul.f32 %v1986_v19, %v731_v49  ;;  %v1496_v63 = vpop.eup %1495  ;;  %v869_v41 = vadd.f32 1.0, %v853_v12  ;;  %v855_v14 = vmul.f32 %v839_v8, %v519_v57  ;;  %vm505_vm15 = vcmp.ge.f32.partialorder %v1880_v23, 0.0  ;;  %1404 = vmatprep.mubr.msk.f32.mxu1 %vm895_vm11, %v881_v42  ;;  %v2191_v8 = vld [vmem:[#allocation5_spill] sm:$0xff] }
 0x14e   : > { %v841_v36 = vsub.f32 1.0, %v825_v27  ;;  %v840_v26 = vsub.f32 1.0, %v824_v10  ;;  %v826_v39 = vmul.f32 %v1494_v62, %v746_v40  ;;  %v748_v18 = vmul.f32 %v1971_v53, %v732_v24  ;;  %v2192_v24 = vld [vmem:[#allocation7_spill] sm:$0xff] }
 0x14f   : > { %v827_v16 = vmul.f32 %v1496_v63, %v747_v6  ;;  %v468_v15 = vmul.f32 0.5, %v1651_v51  ;;  %v469_v55 = vmul.f32 0.5, %v1708_v33  ;;  %v520_v19 = vsel %vm504_vm14, 1.0, %v2176_v47 }
 0x150   : > { %v870_v37 = vadd.f32 1.0, %v854_v44  ;;  %vm506_vm0 = vcmp.ge.f32.partialorder %v1859_v9, 0.0  ;;  %v521_v23 = vsel %vm505_vm15, 1.0, %v2176_v47  ;;  %vm507_vm1 = vcmp.ge.f32.partialorder %v2184_v52, 0.0  ;;  %1405 = vmatmul.mubr.msk.f32.gmra.mrb[4].mxu1 %vm895_vm11, %v882_v13 }
 0x151   : > { %v885_v53 = vmul.f32 %v869_v41, %v469_v55  ;;  %v871_v45 = vadd.f32 1.0, %v855_v14  ;;  %v857_v4 = vmul.f32 %v841_v36, %v521_v23  ;;  %v843_v51 = vsub.f32 1.0, %v827_v16  ;;  %1407 = vmatprep.mubr.msk.f32.mxu1 %vm895_vm11, %v883_v17 }
 0x152   : > { %v1498_v60 = vpop.eup %1497  ;;  %v884_v33 = vmul.f32 %v868_v29, %v468_v15  ;;  %v856_v50 = vmul.f32 %v840_v26, %v520_v19  ;;  %v842_v46 = vsub.f32 1.0, %v826_v39  ;;  %v470_v59 = vmul.f32 0.5, %v2185_v0 }
 0x153   : > { %v828_v3 = vmul.f32 %v1498_v60, %v748_v18  ;;  %v471_v5 = vmul.f32 0.5, %v2186_v20  ;;  %v522_v61 = vsel %vm506_vm0, 1.0, %v2176_v47  ;;  %v523_v21 = vsel %vm507_vm1, 1.0, %v2176_v47 }
 0x154   : > { %1408 = vmatmul.mubr.msk.f32.gmra.mrb[6].mxu1 %vm895_vm11, %v884_v33  ;;  %v886_v31 = vmul.f32 %v870_v37, %v470_v59  ;;  %v873_v7 = vadd.f32 1.0, %v857_v4  ;;  %v859_v1 = vmul.f32 %v843_v51, %v523_v21  ;;  %v872_v54 = vadd.f32 1.0, %v856_v50 }
 0x155   : > { %v887_v58 = vmul.f32 %v871_v45, %v471_v5  ;;  %1410 = vmatprep.mubr.msk.f32.mxu1 %vm895_vm11, %v885_v53  ;;  %v858_v11 = vmul.f32 %v842_v46, %v522_v61  ;;  %vm508_vm2 = vcmp.ge.f32.partialorder %v2187_v28, 0.0  ;;  %v844_v22 = vsub.f32 1.0, %v828_v3 }
 0x156   : > { %v473_v34 = vmul.f32 0.5, %v2188_v48  ;;  %v472_v9 = vmul.f32 0.5, %v2189_v56  ;;  %v524_v43 = vsel %vm508_vm2, 1.0, %v2176_v47  ;;  %v875_v42 = vadd.f32 1.0, %v859_v1 }
 0x157   : > { %v874_v30 = vadd.f32 1.0, %v858_v11  ;;  %v860_v25 = vmul.f32 %v844_v22, %v524_v43  ;;  %v475_v12 = vmul.f32 0.5, %v2190_v32  ;;  %v474_v27 = vmul.f32 0.5, %v2191_v8 }
 0x158   : > { %1411 = vmatmul.mubr.msk.f32.gmra.mrb[8].mxu1 %vm895_vm11, %v886_v31  ;;  %v889_v35 = vmul.f32 %v873_v7, %v473_v34  ;;  %v888_v38 = vmul.f32 %v872_v54, %v472_v9  ;;  %v476_v47 = vmul.f32 0.5, %v2192_v24  ;;  %vm1089_vm3 = vcmask 64512  }
 0x159   : > { %1413 = vmatprep.mubr.msk.f32.mxu1 %vm895_vm11, %v887_v58  ;;  %v891_v62 = vmul.f32 %v875_v42, %v475_v12  ;;  %v890_v10 = vmul.f32 %v874_v30, %v474_v27  ;;  %v876_v40 = vadd.f32 1.0, %v860_v25  ;;  %vm1196_vm4 = vcmask 1040384  }
 0x15a   : > { %vm1198_vm5 = vcmask 58368  }
 0x15b   : > { %v892_v49 = vmul.f32 %v876_v40, %v476_v47 }
 0x15c   : > { %1414 = vmatmul.mubr.msk.f32.gmra.mrb[10].mxu1 %vm895_vm11, %v888_v38 }
 0x15d   : > { %1416 = vmatprep.mubr.msk.f32.mxu1 %vm895_vm11, %v889_v35 }
 0x160   : > { %1417 = vmatmul.mubr.msk.f32.gmra.mrb[12].mxu1 %vm895_vm11, %v890_v10 }
 0x161   : > { %1419 = vmatprep.mubr.msk.f32.mxu1 %vm895_vm11, %v891_v62 }
 0x164   : > { %1420 = vmatmul.mubr.msk.f32.gmra.mrb[14].mxu1 %vm895_vm11, %v892_v49 }
 0x21b   : > { %v1400_v13 = vpop.f32.mrb[0].mxu1 }
 0x21c   : > { %1091 = vst.msk [vmem:[%s2082_s10 + $0x8] sm:$0xff] %vm1089_vm3, %v1400_v13  ;;  %v1107_v29 = vsel %vm1089_vm3, %v1400_v13, 0.0  ;;  %v1144_v2 = vmul.f32 %v1400_v13, %v1400_v13  ;;  %v1010_v17 = vpop.f32.mrb[1].mxu1 }
 0x21d   : > { %1090 = vst.msk [vmem:[%s2082_s10] sm:$0xff] %vm1089_vm3, %v1010_v17  ;;  %v1106_v44 = vsel %vm1089_vm3, %v1010_v17, 0.0  ;;  %v1143_v57 = vmul.f32 %v1010_v17, %v1010_v17 }
 0x21e   : > { %v1160_v6 = vsel %vm1089_vm3, %v1144_v2, 0.0  ;;  %v1108_v63 = vadd.f32 %v1107_v29, %v1106_v44 }
 0x21f   : > { %v1159_v41 = vsel %vm1089_vm3, %v1143_v57, 0.0  ;;  %v1403_v14 = vpop.f32.mrb[2].mxu1 }
 0x220   : > { %v1161_v36 = vadd.f32 %v1160_v6, %v1159_v41  ;;  %1093 = vst.msk [vmem:[%s2082_s10 + $0x18] sm:$0xff] %vm1089_vm3, %v1403_v14  ;;  %v1020_v26 = vpop.f32.mrb[3].mxu1  ;;  %v1146_v39 = vmul.f32 %v1403_v14, %v1403_v14  ;;  %v1111_v55 = vsel %vm1089_vm3, %v1403_v14, 0.0 }
 0x221   : > { %1092 = vst.msk [vmem:[%s2082_s10 + $0x10] sm:$0xff] %vm1089_vm3, %v1020_v26  ;;  %v1109_v18 = vsel %vm1089_vm3, %v1020_v26, 0.0  ;;  %v1145_v16 = vmul.f32 %v1020_v26, %v1020_v26 }
 0x222   : > { %v1110_v15 = vadd.f32 %v1109_v18, %v1108_v63  ;;  %v1164_v53 = vsel %vm1089_vm3, %v1146_v39, 0.0 }
 0x223   : > { %v1162_v19 = vsel %vm1089_vm3, %v1145_v16, 0.0  ;;  %v1406_v37 = vpop.f32.mrb[4].mxu1 }
 0x224   : > { %v1163_v23 = vadd.f32 %v1162_v19, %v1161_v36  ;;  %1095 = vst.msk [vmem:[%s2082_s10 + $0x28] sm:$0xff] %vm1089_vm3, %v1406_v37  ;;  %v1030_v52 = vpop.f32.mrb[5].mxu1  ;;  %v1112_v60 = vadd.f32 %v1111_v55, %v1110_v15  ;;  %v1148_v45 = vmul.f32 %v1406_v37, %v1406_v37  ;;  %v1115_v46 = vsel %vm1089_vm3, %v1406_v37, 0.0 }
 0x225   : > { %1094 = vst.msk [vmem:[%s2082_s10 + $0x20] sm:$0xff] %vm1089_vm3, %v1030_v52  ;;  %v1113_v4 = vsel %vm1089_vm3, %v1030_v52, 0.0  ;;  %v1147_v51 = vmul.f32 %v1030_v52, %v1030_v52 }
 0x226   : > { %v1114_v33 = vadd.f32 %v1113_v4, %v1112_v60  ;;  %v1165_v50 = vadd.f32 %v1164_v53, %v1163_v23  ;;  %v1168_v61 = vsel %vm1089_vm3, %v1148_v45, 0.0 }
 0x227   : > { %v1166_v3 = vsel %vm1089_vm3, %v1147_v51, 0.0  ;;  %v1409_v0 = vpop.f32.mrb[6].mxu1 }
 0x228   : > { %v1167_v59 = vadd.f32 %v1166_v3, %v1165_v50  ;;  %1097 = vst.msk [vmem:[%s2082_s10 + $0x38] sm:$0xff] %vm1089_vm3, %v1409_v0  ;;  %v1040_v20 = vpop.f32.mrb[7].mxu1  ;;  %v1116_v5 = vadd.f32 %v1115_v46, %v1114_v33  ;;  %v1150_v21 = vmul.f32 %v1409_v0, %v1409_v0  ;;  %v1119_v54 = vsel %vm1089_vm3, %v1409_v0, 0.0 }
 0x229   : > { %1096 = vst.msk [vmem:[%s2082_s10 + $0x30] sm:$0xff] %vm1089_vm3, %v1040_v20  ;;  %v1117_v31 = vsel %vm1089_vm3, %v1040_v20, 0.0  ;;  %v1149_v58 = vmul.f32 %v1040_v20, %v1040_v20 }
 0x22a   : > { %v1118_v7 = vadd.f32 %v1117_v31, %v1116_v5  ;;  %v1169_v1 = vadd.f32 %v1168_v61, %v1167_v59  ;;  %v1172_v56 = vsel %vm1089_vm3, %v1150_v21, 0.0 }
 0x22b   : > { %v1170_v11 = vsel %vm1089_vm3, %v1149_v58, 0.0  ;;  %v1412_v28 = vpop.f32.mrb[8].mxu1 }
 0x22c   : > { %v1171_v22 = vadd.f32 %v1170_v11, %v1169_v1  ;;  %1099 = vst.msk [vmem:[%s2082_s10 + $0x48] sm:$0xff] %vm1089_vm3, %v1412_v28  ;;  %v1050_v48 = vpop.f32.mrb[9].mxu1  ;;  %v1120_v34 = vadd.f32 %v1119_v54, %v1118_v7  ;;  %v1152_v9 = vmul.f32 %v1412_v28, %v1412_v28  ;;  %v1123_v30 = vsel %vm1089_vm3, %v1412_v28, 0.0 }
 0x22d   : > { %1098 = vst.msk [vmem:[%s2082_s10 + $0x40] sm:$0xff] %vm1089_vm3, %v1050_v48  ;;  %v1121_v35 = vsel %vm1089_vm3, %v1050_v48, 0.0  ;;  %v1151_v43 = vmul.f32 %v1050_v48, %v1050_v48 }
 0x22e   : > { %v1122_v42 = vadd.f32 %v1121_v35, %v1120_v34  ;;  %v1173_v38 = vadd.f32 %v1172_v56, %v1171_v22  ;;  %v1176_v62 = vsel %vm1089_vm3, %v1152_v9, 0.0 }
 0x22f   : > { %v1174_v25 = vsel %vm1089_vm3, %v1151_v43, 0.0  ;;  %v1415_v32 = vpop.f32.mrb[10].mxu1 }
 0x230   : > { %v1175_v12 = vadd.f32 %v1174_v25, %v1173_v38  ;;  %1101 = vst.msk [vmem:[%s2082_s10 + $0x58] sm:$0xff] %vm1089_vm3, %v1415_v32  ;;  %v1060_v8 = vpop.f32.mrb[11].mxu1  ;;  %v1124_v27 = vadd.f32 %v1123_v30, %v1122_v42  ;;  %v1154_v10 = vmul.f32 %v1415_v32, %v1415_v32  ;;  %v1127_v13 = vsel %vm1089_vm3, %v1415_v32, 0.0 }
 0x231   : > { %1100 = vst.msk [vmem:[%s2082_s10 + $0x50] sm:$0xff] %vm1089_vm3, %v1060_v8  ;;  %v1125_v40 = vsel %vm1089_vm3, %v1060_v8, 0.0  ;;  %v1153_v24 = vmul.f32 %v1060_v8, %v1060_v8 }
 0x232   : > { %v1126_v47 = vadd.f32 %v1125_v40, %v1124_v27  ;;  %v1177_v49 = vadd.f32 %v1176_v62, %v1175_v12  ;;  %v1180_v6 = vsel %vm1089_vm3, %v1154_v10, 0.0 }
 0x233   : > { %v1178_v29 = vsel %vm1089_vm3, %v1153_v24, 0.0  ;;  %v1418_v2 = vpop.f32.mrb[12].mxu1 }
 0x234   : > { %v1179_v17 = vadd.f32 %v1178_v29, %v1177_v49  ;;  %1103 = vst.msk [vmem:[%s2082_s10 + $0x68] sm:$0xff] %vm1089_vm3, %v1418_v2  ;;  %v1070_v44 = vpop.f32.mrb[13].mxu1  ;;  %v1128_v57 = vadd.f32 %v1127_v13, %v1126_v47  ;;  %v1156_v63 = vmul.f32 %v1418_v2, %v1418_v2  ;;  %v1131_v39 = vsel %vm1089_vm3, %v1418_v2, 0.0 }
 0x235   : > { %1102 = vst.msk [vmem:[%s2082_s10 + $0x60] sm:$0xff] %vm1089_vm3, %v1070_v44  ;;  %v1129_v41 = vsel %vm1089_vm3, %v1070_v44, 0.0  ;;  %v1155_v14 = vmul.f32 %v1070_v44, %v1070_v44 }
 0x236   : > { %v1130_v36 = vadd.f32 %v1129_v41, %v1128_v57  ;;  %v1181_v26 = vadd.f32 %v1180_v6, %v1179_v17  ;;  %v1184_v37 = vsel %vm1089_vm3, %v1156_v63, 0.0 }
 0x237   : > { %v1182_v18 = vsel %vm1089_vm3, %v1155_v14, 0.0  ;;  %v1421_v16 = vpop.f32.mrb[14].mxu1 }
 0x238   : > { %v1183_v15 = vadd.f32 %v1182_v18, %v1181_v26  ;;  %1105 = vst.msk [vmem:[%s2082_s10 + $0x78] sm:$0xff] %vm1089_vm3, %v1421_v16  ;;  %v1080_v55 = vpop.f32.mrb[15].mxu1  ;;  %v1132_v19 = vadd.f32 %v1131_v39, %v1130_v36  ;;  %v1158_v23 = vmul.f32 %v1421_v16, %v1421_v16  ;;  %v1135_v4 = vsel %vm1089_vm3, %v1421_v16, 0.0 }
 0x239   : > { %1104 = vst.msk [vmem:[%s2082_s10 + $0x70] sm:$0xff] %vm1089_vm3, %v1080_v55  ;;  %v1133_v52 = vsel %vm1089_vm3, %v1080_v55, 0.0  ;;  %v1157_v60 = vmul.f32 %v1080_v55, %v1080_v55 }
 0x23a   : > { %v1134_v53 = vadd.f32 %v1133_v52, %v1132_v19  ;;  %v1185_v45 = vadd.f32 %v1184_v37, %v1183_v15  ;;  %v1188_v46 = vsel %vm1089_vm3, %v1158_v23, 0.0 }
 0x23b   : > { %v1186_v51 = vsel %vm1089_vm3, %v1157_v60, 0.0 }
 0x23c   : > { %v1136_v33 = vadd.f32 %v1135_v4, %v1134_v53  ;;  %v1187_v50 = vadd.f32 %v1186_v51, %v1185_v45 }
 0x23e   : > { %v1137_v3 = vrot.slane %v1136_v33, 4  ;;  %v1189_v0 = vadd.f32 %v1188_v46, %v1187_v50 }
 0x240   : > { %v1138_v59 = vadd.f32 %v1137_v3, %v1136_v33  ;;  %v1190_v20 = vrot.slane %v1189_v0, 4 }
 0x242   : > { %v1139_v5 = vrot.slane %v1138_v59, 2  ;;  %v1191_v61 = vadd.f32 %v1190_v20, %v1189_v0 }
 0x244   : > { %v1140_v21 = vadd.f32 %v1139_v5, %v1138_v59  ;;  %v1192_v31 = vrot.slane %v1191_v61, 2 }
 0x246   : > { %v1141_v58 = vrot.slane %v1140_v21, 1  ;;  %v1193_v7 = vadd.f32 %v1192_v31, %v1191_v61 }
 0x248   : > { %v1194_v1 = vrot.slane %v1193_v7, 1  ;;  %v1142_v54 = vadd.f32 %v1141_v58, %v1140_v21 }
 0x24a   : > { %v1195_v11 = vadd.f32 %v1194_v1, %v1193_v7 }
 0x24c   : > { %v1197_v28 = vsel %vm1196_vm4, %v1142_v54, %v1195_v11 }
 0x24d   : > { %1199 = vst.msk [vmem:[%s238_s14] sm:$0x3] %vm1198_vm5, %v1197_v28 }
 0x24e PF: > { %s16_s18 = sadd.s32 1, %s1505_s18  }
 0x24f   : > { %p13_p5 = scmp.ge.s32.totalorder %s16_s18, 6  }
 0x251   :  { %15 = sbr.rel (!%p13_p5) target bundleno = 1 (0x1), region = 78 }

</bundles_post_ra>
